<compile_context>
chip_gen: v5e
topology: v5e:2x2
jax: 0.10.0
libtpu: 0.0.40
codegen_flags: <defaults>
</compile_context>

<pallas_src>
import math
import functools

import jax
import jax.numpy as jnp
from jax.experimental import pallas as pl
from jax.experimental.pallas import tpu as pltpu


def _vmem():
    return pl.BlockSpec(memory_space=pltpu.MemorySpace.VMEM)


# ------------------------------ fused kernel ------------------------------- #

def _encoder_kernel(
    nhead, num_layers,
    # activations / constant masks
    x_ref,       # (R, Kp)   zero-padded projection input, R = B*T
    pos_ref,     # (R, E)    positional encoding pre-broadcast over B
    bias_ref,    # (R, R)    additive attention mask: 0 if same t, -1e30 otherwise
    hmask_ref,   # (H, E)    one-hot head selector along the feature axis
    # projection
    pw_ref, pb_ref,              # (Kp, E), (1, E)
    # per-layer weights, stacked on a leading layer axis L
    wqkv_ref, bqkv_ref,          # (L, E, 3E), (L, 1, 3E)   fused in_proj
    wo_ref, bo_ref,              # (L, E, E), (L, 1, E)     attention out proj
    w1_ref, b1_ref,              # (L, E, F), (L, 1, F)
    w2_ref, b2_ref,              # (L, F, E), (L, 1, E)
    g1_ref, be1_ref,             # (L, 1, E)  norm1 (post-attention)
    g2_ref, be2_ref,             # (L, 1, E)  norm2 (post-FFN)
    gf_ref, bf_ref,              # (1, E)     final LayerNorm
    # output
    o_ref,       # (R, E)
):
    f32 = jnp.float32
    E = o_ref.shape[-1]
    dh = E // nhead
    scale = 1.0 / math.sqrt(dh)

    def matmul(a, w, b):
        # bias add fused with the matmul result before anything is stored
        return jnp.dot(a, w, preferred_element_type=f32) + b

    def layernorm(x, g, b):
        mean = jnp.mean(x, axis=-1, keepdims=True)
        c = x - mean
        var = jnp.mean(c * c, axis=-1, keepdims=True)
        return c * jax.lax.rsqrt(var + 1e-5) * g + b

    # Loop-invariant masks: load / slice once, reuse across layers & heads.
    attn_bias = bias_ref[...]
    head_mask = hmask_ref[...]
    hms = [head_mask[h:h + 1, :] for h in range(nhead)]      # (1, E) one-hot each

    # x = rcnn_projection(rcnn_features) + pos_encoder   (fused)
    x = matmul(x_ref[...], pw_ref[...], pb_ref[...]) + pos_ref[...]

    for l in range(num_layers):          # static unroll over encoder layers
        # ---- self-attention block (post-norm residual) ----
        # single fused in_proj matmul: (R, E) x (E, 3E) -> (R, 3E)
        qkv = matmul(x, wqkv_ref[l], bqkv_ref[l])
        q = qkv[:, 0:E] * scale          # PyTorch scales q (bias included)
        k = qkv[:, E:2 * E]
        v = qkv[:, 2 * E:3 * E]

        attn = jnp.zeros_like(x)
        for h in range(nhead):           # heads stay on the lane axis (width E)
            hm = hms[h]
            # scores: dense (R, E) x (E, R) MXU matmul; zeros in q*hm make the
            # contraction equal to the per-head dh-dim dot product exactly.
            s = jax.lax.dot_general(
                q * hm, k, (((1,), (1,)), ((), ())),
                preferred_element_type=f32)                  # (R, R)
            s = s + attn_bias                                # keep only same-t pairs
            s = s - jnp.max(s, axis=-1, keepdims=True)
            p = jnp.exp(s)
            p = p * pl.reciprocal(jnp.sum(p, axis=-1, keepdims=True), approx=True)
            # only head-h feature columns of v*hm are non-zero -> direct accumulate
            attn = attn + jnp.dot(p, v * hm, preferred_element_type=f32)

        attn = matmul(attn, wo_ref[l], bo_ref[l])
        x = layernorm(x + attn, g1_ref[l], be1_ref[l])

        # ---- feed-forward block ----
        hdn = jnp.maximum(matmul(x, w1_ref[l], b1_ref[l]), 0.0)
        x = layernorm(x + matmul(hdn, w2_ref[l], b2_ref[l]), g2_ref[l], be2_ref[l])

    # encoded_features = self.norm(encoded_features)
    o_ref[...] = layernorm(x, gf_ref[...], bf_ref[...])


# ------------------------------ parameters --------------------------------- #

def init_params(key, input_dim=5, d_model=64, nhead=4, num_layers=2,
                dim_feedforward=128):
    """Synthetic parameters; shapes follow the PyTorch module (weights stored
    transposed for x @ W; MultiheadAttention's in_proj kept fused as (E, 3E),
    layers stacked on axis 0).  A real checkpoint maps 1:1 onto this layout."""
    def nrm(k, shape, scale=0.02):
        return (scale * jax.random.normal(k, shape)).astype(jnp.float32)

    kp = 8 * ((input_dim + 7) // 8)          # pad K of the projection to 8
    keys = jax.random.split(key, 8)

    proj_w = jnp.zeros((kp, d_model), jnp.float32)
    proj_w = proj_w.at[:input_dim].set(nrm(keys[0], (input_dim, d_model)))

    L = num_layers
    params = {
        "proj_w": proj_w,
        "proj_b": jnp.zeros((1, d_model), jnp.float32),
        # nn.Parameter(torch.randn(1, 10, d_model))
        "pos": jax.random.normal(keys[1], (1, 10, d_model)).astype(jnp.float32),
        # final nn.LayerNorm(d_model)
        "norm_g": jnp.ones((1, d_model), jnp.float32),
        "norm_b": jnp.zeros((1, d_model), jnp.float32),
        # MultiheadAttention fused in_proj (q|k|v along the output axis),
        # stacked over layers — same layout as PyTorch's in_proj_weight.T
        "wqkv": nrm(keys[2], (L, d_model, 3 * d_model)),
        "bqkv": jnp.zeros((L, 1, 3 * d_model), jnp.float32),
        "wo": nrm(keys[3], (L, d_model, d_model)),
        "bo": jnp.zeros((L, 1, d_model), jnp.float32),
        # feed-forward
        "w1": nrm(keys[4], (L, d_model, dim_feedforward)),
        "b1": jnp.zeros((L, 1, dim_feedforward), jnp.float32),
        "w2": nrm(keys[5], (L, dim_feedforward, d_model)),
        "b2": jnp.zeros((L, 1, d_model), jnp.float32),
        # per-layer LayerNorms
        "ln1_g": jnp.ones((L, 1, d_model), jnp.float32),
        "ln1_b": jnp.zeros((L, 1, d_model), jnp.float32),
        "ln2_g": jnp.ones((L, 1, d_model), jnp.float32),
        "ln2_b": jnp.zeros((L, 1, d_model), jnp.float32),
    }
    return params


# ------------------------------ forward pass -------------------------------- #

def local_feature_encoder(params, rcnn_features, *, nhead):
    B, T, Din = rcnn_features.shape
    E = params["pos"].shape[-1]
    L = params["wqkv"].shape[0]
    H = nhead
    R = B * T
    assert T == params["pos"].shape[1], "pos_encoder is fixed to 10 tokens"

    Kp = params["proj_w"].shape[0]
    x = rcnn_features.reshape(R, Din).astype(jnp.float32)
    x = jnp.pad(x, ((0, 0), (0, Kp - Din)))                    # zero-pad K: 5 -> 8

    # positional encoding broadcast over B, flattened to row layout (b-major)
    pos_rows = jnp.broadcast_to(params["pos"][0], (B, T, E)).reshape(R, E)

    # attention is over dim 0 (B) for each t independently (batch_first=False):
    # additive mask keeping only row pairs with the same t
    t_idx = jnp.arange(R, dtype=jnp.int32) % T
    attn_bias = jnp.where(t_idx[:, None] == t_idx[None, :], 0.0, -1e30
                          ).astype(jnp.float32)

    # one-hot head selector over the feature axis
    d_head = jnp.arange(E, dtype=jnp.int32) // (E // H)
    head_mask = (d_head[None, :] == jnp.arange(H, dtype=jnp.int32)[:, None]
                 ).astype(jnp.float32)

    kernel = functools.partial(_encoder_kernel, H, L)
    out = pl.pallas_call(
        kernel,
        out_shape=jax.ShapeDtypeStruct((R, E), jnp.float32),
        in_specs=[_vmem()] * 20,
        out_specs=_vmem(),
        compiler_params=pltpu.CompilerParams(vmem_limit_bytes=32 * 1024 * 1024),
    )(
        x, pos_rows, attn_bias, head_mask,
        params["proj_w"], params["proj_b"],
        params["wqkv"], params["bqkv"],
        params["wo"], params["bo"],
        params["w1"], params["b1"],
        params["w2"], params["b2"],
        params["ln1_g"], params["ln1_b"],
        params["ln2_g"], params["ln2_b"],
        params["norm_g"], params["norm_b"],
    )
    return out.reshape(B, T, E)


# ---------------------------------- main ------------------------------------ #

if __name__ == "__main__":
    # Small test config (PyTorch defaults are d_model=768, nhead=8, 6 layers,
    # dim_feedforward=2048 — scaled down for a quick synthetic run).
    INPUT_DIM, D_MODEL, NHEAD, NUM_LAYERS, DFF = 5, 64, 4, 2, 128
    B, T = 2, 10   # T=10 is fixed by the (1, 10, d_model) positional encoding

    key = jax.random.PRNGKey(0)
    pkey, xkey = jax.random.split(key)
    params = init_params(pkey, input_dim=INPUT_DIM, d_model=D_MODEL,
                         nhead=NHEAD, num_layers=NUM_LAYERS,
                         dim_feedforward=DFF)
    rcnn_features = jax.random.normal(xkey, (B, T, INPUT_DIM), dtype=jnp.float32)

    fwd = jax.jit(functools.partial(local_feature_encoder, nhead=NHEAD))
    out = jax.block_until_ready(fwd(params, rcnn_features))

    assert out.shape == (B, T, D_MODEL), out.shape
    assert jnp.all(jnp.isfinite(out))
    print("KERNEL_OK")
</pallas_src>

<mosaic_0001>
module attributes {stable_mosaic.version = 11 : i64} {
  func.func @_encoder_kernel(%arg0: memref<20x8xf32, #tpu.memory_space<vmem>>, %arg1: memref<20x64xf32, #tpu.memory_space<vmem>>, %arg2: memref<20x20xf32, #tpu.memory_space<vmem>>, %arg3: memref<4x64xf32, #tpu.memory_space<vmem>>, %arg4: memref<8x64xf32, #tpu.memory_space<vmem>>, %arg5: memref<1x64xf32, #tpu.memory_space<vmem>>, %arg6: memref<2x64x192xf32, #tpu.memory_space<vmem>>, %arg7: memref<2x1x192xf32, #tpu.memory_space<vmem>>, %arg8: memref<2x64x64xf32, #tpu.memory_space<vmem>>, %arg9: memref<2x1x64xf32, #tpu.memory_space<vmem>>, %arg10: memref<2x64x128xf32, #tpu.memory_space<vmem>>, %arg11: memref<2x1x128xf32, #tpu.memory_space<vmem>>, %arg12: memref<2x128x64xf32, #tpu.memory_space<vmem>>, %arg13: memref<2x1x64xf32, #tpu.memory_space<vmem>>, %arg14: memref<2x1x64xf32, #tpu.memory_space<vmem>>, %arg15: memref<2x1x64xf32, #tpu.memory_space<vmem>>, %arg16: memref<2x1x64xf32, #tpu.memory_space<vmem>>, %arg17: memref<2x1x64xf32, #tpu.memory_space<vmem>>, %arg18: memref<1x64xf32, #tpu.memory_space<vmem>>, %arg19: memref<1x64xf32, #tpu.memory_space<vmem>>, %arg20: memref<20x64xf32, #tpu.memory_space<vmem>>) attributes {dimension_semantics = [], scalar_prefetch = 0 : i64, scratch_operands = 0 : i64, tpu.core_type = #tpu.core_type<tc>} {
    %c0 = arith.constant 0 : index
    %c0_0 = arith.constant 0 : index
    %0 = vector.load %arg2[%c0, %c0_0] : memref<20x20xf32, #tpu.memory_space<vmem>>, vector<20x20xf32>
    %c0_1 = arith.constant 0 : index
    %c0_2 = arith.constant 0 : index
    %1 = vector.load %arg3[%c0_1, %c0_2] : memref<4x64xf32, #tpu.memory_space<vmem>>, vector<4x64xf32>
    %2 = vector.extract_strided_slice %1 {offsets = [0, 0], sizes = [1, 64], strides = [1, 1]} : vector<4x64xf32> to vector<1x64xf32>
    %3 = vector.extract_strided_slice %1 {offsets = [1, 0], sizes = [1, 64], strides = [1, 1]} : vector<4x64xf32> to vector<1x64xf32>
    %4 = vector.extract_strided_slice %1 {offsets = [2, 0], sizes = [1, 64], strides = [1, 1]} : vector<4x64xf32> to vector<1x64xf32>
    %5 = vector.extract_strided_slice %1 {offsets = [3, 0], sizes = [1, 64], strides = [1, 1]} : vector<4x64xf32> to vector<1x64xf32>
    %c0_3 = arith.constant 0 : index
    %c0_4 = arith.constant 0 : index
    %6 = vector.load %arg0[%c0_3, %c0_4] : memref<20x8xf32, #tpu.memory_space<vmem>>, vector<20x8xf32>
    %c0_5 = arith.constant 0 : index
    %c0_6 = arith.constant 0 : index
    %7 = vector.load %arg4[%c0_5, %c0_6] : memref<8x64xf32, #tpu.memory_space<vmem>>, vector<8x64xf32>
    %c0_7 = arith.constant 0 : index
    %c0_8 = arith.constant 0 : index
    %8 = vector.load %arg5[%c0_7, %c0_8] : memref<1x64xf32, #tpu.memory_space<vmem>>, vector<1x64xf32>
    %cst = arith.constant dense<0.000000e+00> : vector<20x64xf32>
    %9 = tpu.matmul %6, %7, %cst {dimension_numbers = #tpu.dot_dimension_numbers<[1], [0], [0], [1], [0, 0, 1, 1], [], []>} : vector<20x8xf32>, vector<8x64xf32>, vector<20x64xf32> -> vector<20x64xf32>
    %10 = vector.broadcast %8 : vector<1x64xf32> to vector<20x64xf32>
    %11 = arith.addf %9, %10 : vector<20x64xf32>
    %c0_9 = arith.constant 0 : index
    %c0_10 = arith.constant 0 : index
    %12 = vector.load %arg1[%c0_9, %c0_10] : memref<20x64xf32, #tpu.memory_space<vmem>>, vector<20x64xf32>
    %13 = arith.addf %11, %12 : vector<20x64xf32>
    %c0_11 = arith.constant 0 : index
    %c0_12 = arith.constant 0 : index
    %c0_13 = arith.constant 0 : index
    %14 = vector.load %arg6[%c0_11, %c0_12, %c0_13] : memref<2x64x192xf32, #tpu.memory_space<vmem>>, vector<1x64x192xf32>
    %15 = vector.shape_cast %14 : vector<1x64x192xf32> to vector<64x192xf32>
    %c0_14 = arith.constant 0 : index
    %c0_15 = arith.constant 0 : index
    %c0_16 = arith.constant 0 : index
    %16 = vector.load %arg7[%c0_14, %c0_15, %c0_16] : memref<2x1x192xf32, #tpu.memory_space<vmem>>, vector<1x1x192xf32>
    %17 = vector.shape_cast %16 : vector<1x1x192xf32> to vector<1x192xf32>
    %cst_17 = arith.constant dense<0.000000e+00> : vector<20x192xf32>
    %18 = tpu.matmul %13, %15, %cst_17 {dimension_numbers = #tpu.dot_dimension_numbers<[1], [0], [0], [1], [0, 0, 1, 1], [], []>} : vector<20x64xf32>, vector<64x192xf32>, vector<20x192xf32> -> vector<20x192xf32>
    %19 = vector.broadcast %17 : vector<1x192xf32> to vector<20x192xf32>
    %20 = arith.addf %18, %19 : vector<20x192xf32>
    %21 = vector.extract_strided_slice %20 {offsets = [0, 0], sizes = [20, 64], strides = [1, 1]} : vector<20x192xf32> to vector<20x64xf32>
    %cst_18 = arith.constant 2.500000e-01 : f32
    %22 = vector.broadcast %cst_18 : f32 to vector<20x64xf32>
    %23 = arith.mulf %21, %22 : vector<20x64xf32>
    %24 = vector.extract_strided_slice %20 {offsets = [0, 64], sizes = [20, 64], strides = [1, 1]} : vector<20x192xf32> to vector<20x64xf32>
    %25 = vector.extract_strided_slice %20 {offsets = [0, 128], sizes = [20, 64], strides = [1, 1]} : vector<20x192xf32> to vector<20x64xf32>
    %cst_19 = arith.constant 0.000000e+00 : f32
    %26 = vector.broadcast %cst_19 : f32 to vector<20x64xf32>
    %27 = vector.broadcast %2 : vector<1x64xf32> to vector<20x64xf32>
    %28 = arith.mulf %23, %27 : vector<20x64xf32>
    %cst_20 = arith.constant dense<0.000000e+00> : vector<20x20xf32>
    %29 = tpu.matmul %28, %24, %cst_20 {dimension_numbers = #tpu.dot_dimension_numbers<[1], [1], [0], [0], [0, 0, 1, 0], [], []>} : vector<20x64xf32>, vector<20x64xf32>, vector<20x20xf32> -> vector<20x20xf32>
    %30 = arith.addf %29, %0 : vector<20x20xf32>
    %cst_21 = arith.constant dense<0xFF800000> : vector<20xf32>
    %31 = vector.multi_reduction <maximumf>, %30, %cst_21 [1] : vector<20x20xf32> to vector<20xf32>
    %32 = vector.shape_cast %31 : vector<20xf32> to vector<20x1xf32>
    %33 = vector.broadcast %32 : vector<20x1xf32> to vector<20x20xf32>
    %34 = arith.subf %30, %33 : vector<20x20xf32>
    %35 = math.exp %34 : vector<20x20xf32>
    %cst_22 = arith.constant dense<0.000000e+00> : vector<20xf32>
    %36 = vector.multi_reduction <add>, %35, %cst_22 [1] : vector<20x20xf32> to vector<20xf32>
    %37 = vector.shape_cast %36 : vector<20xf32> to vector<20x1xf32>
    %38 = tpu.reciprocal %37 {approx = true} : vector<20x1xf32> -> vector<20x1xf32>
    %39 = vector.broadcast %38 : vector<20x1xf32> to vector<20x20xf32>
    %40 = arith.mulf %35, %39 : vector<20x20xf32>
    %41 = vector.broadcast %2 : vector<1x64xf32> to vector<20x64xf32>
    %42 = arith.mulf %25, %41 : vector<20x64xf32>
    %cst_23 = arith.constant dense<0.000000e+00> : vector<20x64xf32>
    %43 = tpu.matmul %40, %42, %cst_23 {dimension_numbers = #tpu.dot_dimension_numbers<[1], [0], [0], [1], [0, 0, 1, 1], [], []>} : vector<20x20xf32>, vector<20x64xf32>, vector<20x64xf32> -> vector<20x64xf32>
    %44 = arith.addf %26, %43 : vector<20x64xf32>
    %45 = vector.broadcast %3 : vector<1x64xf32> to vector<20x64xf32>
    %46 = arith.mulf %23, %45 : vector<20x64xf32>
    %cst_24 = arith.constant dense<0.000000e+00> : vector<20x20xf32>
    %47 = tpu.matmul %46, %24, %cst_24 {dimension_numbers = #tpu.dot_dimension_numbers<[1], [1], [0], [0], [0, 0, 1, 0], [], []>} : vector<20x64xf32>, vector<20x64xf32>, vector<20x20xf32> -> vector<20x20xf32>
    %48 = arith.addf %47, %0 : vector<20x20xf32>
    %cst_25 = arith.constant dense<0xFF800000> : vector<20xf32>
    %49 = vector.multi_reduction <maximumf>, %48, %cst_25 [1] : vector<20x20xf32> to vector<20xf32>
    %50 = vector.shape_cast %49 : vector<20xf32> to vector<20x1xf32>
    %51 = vector.broadcast %50 : vector<20x1xf32> to vector<20x20xf32>
    %52 = arith.subf %48, %51 : vector<20x20xf32>
    %53 = math.exp %52 : vector<20x20xf32>
    %cst_26 = arith.constant dense<0.000000e+00> : vector<20xf32>
    %54 = vector.multi_reduction <add>, %53, %cst_26 [1] : vector<20x20xf32> to vector<20xf32>
    %55 = vector.shape_cast %54 : vector<20xf32> to vector<20x1xf32>
    %56 = tpu.reciprocal %55 {approx = true} : vector<20x1xf32> -> vector<20x1xf32>
    %57 = vector.broadcast %56 : vector<20x1xf32> to vector<20x20xf32>
    %58 = arith.mulf %53, %57 : vector<20x20xf32>
    %59 = vector.broadcast %3 : vector<1x64xf32> to vector<20x64xf32>
    %60 = arith.mulf %25, %59 : vector<20x64xf32>
    %cst_27 = arith.constant dense<0.000000e+00> : vector<20x64xf32>
    %61 = tpu.matmul %58, %60, %cst_27 {dimension_numbers = #tpu.dot_dimension_numbers<[1], [0], [0], [1], [0, 0, 1, 1], [], []>} : vector<20x20xf32>, vector<20x64xf32>, vector<20x64xf32> -> vector<20x64xf32>
    %62 = arith.addf %44, %61 : vector<20x64xf32>
    %63 = vector.broadcast %4 : vector<1x64xf32> to vector<20x64xf32>
    %64 = arith.mulf %23, %63 : vector<20x64xf32>
    %cst_28 = arith.constant dense<0.000000e+00> : vector<20x20xf32>
    %65 = tpu.matmul %64, %24, %cst_28 {dimension_numbers = #tpu.dot_dimension_numbers<[1], [1], [0], [0], [0, 0, 1, 0], [], []>} : vector<20x64xf32>, vector<20x64xf32>, vector<20x20xf32> -> vector<20x20xf32>
    %66 = arith.addf %65, %0 : vector<20x20xf32>
    %cst_29 = arith.constant dense<0xFF800000> : vector<20xf32>
    %67 = vector.multi_reduction <maximumf>, %66, %cst_29 [1] : vector<20x20xf32> to vector<20xf32>
    %68 = vector.shape_cast %67 : vector<20xf32> to vector<20x1xf32>
    %69 = vector.broadcast %68 : vector<20x1xf32> to vector<20x20xf32>
    %70 = arith.subf %66, %69 : vector<20x20xf32>
    %71 = math.exp %70 : vector<20x20xf32>
    %cst_30 = arith.constant dense<0.000000e+00> : vector<20xf32>
    %72 = vector.multi_reduction <add>, %71, %cst_30 [1] : vector<20x20xf32> to vector<20xf32>
    %73 = vector.shape_cast %72 : vector<20xf32> to vector<20x1xf32>
    %74 = tpu.reciprocal %73 {approx = true} : vector<20x1xf32> -> vector<20x1xf32>
    %75 = vector.broadcast %74 : vector<20x1xf32> to vector<20x20xf32>
    %76 = arith.mulf %71, %75 : vector<20x20xf32>
    %77 = vector.broadcast %4 : vector<1x64xf32> to vector<20x64xf32>
    %78 = arith.mulf %25, %77 : vector<20x64xf32>
    %cst_31 = arith.constant dense<0.000000e+00> : vector<20x64xf32>
    %79 = tpu.matmul %76, %78, %cst_31 {dimension_numbers = #tpu.dot_dimension_numbers<[1], [0], [0], [1], [0, 0, 1, 1], [], []>} : vector<20x20xf32>, vector<20x64xf32>, vector<20x64xf32> -> vector<20x64xf32>
    %80 = arith.addf %62, %79 : vector<20x64xf32>
    %81 = vector.broadcast %5 : vector<1x64xf32> to vector<20x64xf32>
    %82 = arith.mulf %23, %81 : vector<20x64xf32>
    %cst_32 = arith.constant dense<0.000000e+00> : vector<20x20xf32>
    %83 = tpu.matmul %82, %24, %cst_32 {dimension_numbers = #tpu.dot_dimension_numbers<[1], [1], [0], [0], [0, 0, 1, 0], [], []>} : vector<20x64xf32>, vector<20x64xf32>, vector<20x20xf32> -> vector<20x20xf32>
    %84 = arith.addf %83, %0 : vector<20x20xf32>
    %cst_33 = arith.constant dense<0xFF800000> : vector<20xf32>
    %85 = vector.multi_reduction <maximumf>, %84, %cst_33 [1] : vector<20x20xf32> to vector<20xf32>
    %86 = vector.shape_cast %85 : vector<20xf32> to vector<20x1xf32>
    %87 = vector.broadcast %86 : vector<20x1xf32> to vector<20x20xf32>
    %88 = arith.subf %84, %87 : vector<20x20xf32>
    %89 = math.exp %88 : vector<20x20xf32>
    %cst_34 = arith.constant dense<0.000000e+00> : vector<20xf32>
    %90 = vector.multi_reduction <add>, %89, %cst_34 [1] : vector<20x20xf32> to vector<20xf32>
    %91 = vector.shape_cast %90 : vector<20xf32> to vector<20x1xf32>
    %92 = tpu.reciprocal %91 {approx = true} : vector<20x1xf32> -> vector<20x1xf32>
    %93 = vector.broadcast %92 : vector<20x1xf32> to vector<20x20xf32>
    %94 = arith.mulf %89, %93 : vector<20x20xf32>
    %95 = vector.broadcast %5 : vector<1x64xf32> to vector<20x64xf32>
    %96 = arith.mulf %25, %95 : vector<20x64xf32>
    %cst_35 = arith.constant dense<0.000000e+00> : vector<20x64xf32>
    %97 = tpu.matmul %94, %96, %cst_35 {dimension_numbers = #tpu.dot_dimension_numbers<[1], [0], [0], [1], [0, 0, 1, 1], [], []>} : vector<20x20xf32>, vector<20x64xf32>, vector<20x64xf32> -> vector<20x64xf32>
    %98 = arith.addf %80, %97 : vector<20x64xf32>
    %c0_36 = arith.constant 0 : index
    %c0_37 = arith.constant 0 : index
    %c0_38 = arith.constant 0 : index
    %99 = vector.load %arg8[%c0_36, %c0_37, %c0_38] : memref<2x64x64xf32, #tpu.memory_space<vmem>>, vector<1x64x64xf32>
    %100 = vector.shape_cast %99 : vector<1x64x64xf32> to vector<64x64xf32>
    %c0_39 = arith.constant 0 : index
    %c0_40 = arith.constant 0 : index
    %c0_41 = arith.constant 0 : index
    %101 = vector.load %arg9[%c0_39, %c0_40, %c0_41] : memref<2x1x64xf32, #tpu.memory_space<vmem>>, vector<1x1x64xf32>
    %102 = vector.shape_cast %101 : vector<1x1x64xf32> to vector<1x64xf32>
    %cst_42 = arith.constant dense<0.000000e+00> : vector<20x64xf32>
    %103 = tpu.matmul %98, %100, %cst_42 {dimension_numbers = #tpu.dot_dimension_numbers<[1], [0], [0], [1], [0, 0, 1, 1], [], []>} : vector<20x64xf32>, vector<64x64xf32>, vector<20x64xf32> -> vector<20x64xf32>
    %104 = vector.broadcast %102 : vector<1x64xf32> to vector<20x64xf32>
    %105 = arith.addf %103, %104 : vector<20x64xf32>
    %106 = arith.addf %13, %105 : vector<20x64xf32>
    %c0_43 = arith.constant 0 : index
    %c0_44 = arith.constant 0 : index
    %c0_45 = arith.constant 0 : index
    %107 = vector.load %arg14[%c0_43, %c0_44, %c0_45] : memref<2x1x64xf32, #tpu.memory_space<vmem>>, vector<1x1x64xf32>
    %108 = vector.shape_cast %107 : vector<1x1x64xf32> to vector<1x64xf32>
    %c0_46 = arith.constant 0 : index
    %c0_47 = arith.constant 0 : index
    %c0_48 = arith.constant 0 : index
    %109 = vector.load %arg15[%c0_46, %c0_47, %c0_48] : memref<2x1x64xf32, #tpu.memory_space<vmem>>, vector<1x1x64xf32>
    %110 = vector.shape_cast %109 : vector<1x1x64xf32> to vector<1x64xf32>
    %cst_49 = arith.constant dense<0.000000e+00> : vector<20xf32>
    %111 = vector.multi_reduction <add>, %106, %cst_49 [1] : vector<20x64xf32> to vector<20xf32>
    %112 = vector.shape_cast %111 : vector<20xf32> to vector<20x1xf32>
    %cst_50 = arith.constant 6.400000e+01 : f32
    %113 = vector.broadcast %cst_50 : f32 to vector<20x1xf32>
    %114 = arith.divf %112, %113 : vector<20x1xf32>
    %115 = vector.broadcast %114 : vector<20x1xf32> to vector<20x64xf32>
    %116 = arith.subf %106, %115 : vector<20x64xf32>
    %117 = arith.mulf %116, %116 : vector<20x64xf32>
    %cst_51 = arith.constant dense<0.000000e+00> : vector<20xf32>
    %118 = vector.multi_reduction <add>, %117, %cst_51 [1] : vector<20x64xf32> to vector<20xf32>
    %119 = vector.shape_cast %118 : vector<20xf32> to vector<20x1xf32>
    %cst_52 = arith.constant 6.400000e+01 : f32
    %120 = vector.broadcast %cst_52 : f32 to vector<20x1xf32>
    %121 = arith.divf %119, %120 : vector<20x1xf32>
    %cst_53 = arith.constant 9.99999974E-6 : f32
    %122 = vector.broadcast %cst_53 : f32 to vector<20x1xf32>
    %123 = arith.addf %121, %122 : vector<20x1xf32>
    %124 = math.rsqrt %123 : vector<20x1xf32>
    %125 = vector.broadcast %124 : vector<20x1xf32> to vector<20x64xf32>
    %126 = arith.mulf %116, %125 : vector<20x64xf32>
    %127 = vector.broadcast %108 : vector<1x64xf32> to vector<20x64xf32>
    %128 = arith.mulf %126, %127 : vector<20x64xf32>
    %129 = vector.broadcast %110 : vector<1x64xf32> to vector<20x64xf32>
    %130 = arith.addf %128, %129 : vector<20x64xf32>
    %c0_54 = arith.constant 0 : index
    %c0_55 = arith.constant 0 : index
    %c0_56 = arith.constant 0 : index
    %131 = vector.load %arg10[%c0_54, %c0_55, %c0_56] : memref<2x64x128xf32, #tpu.memory_space<vmem>>, vector<1x64x128xf32>
    %132 = vector.shape_cast %131 : vector<1x64x128xf32> to vector<64x128xf32>
    %c0_57 = arith.constant 0 : index
    %c0_58 = arith.constant 0 : index
    %c0_59 = arith.constant 0 : index
    %133 = vector.load %arg11[%c0_57, %c0_58, %c0_59] : memref<2x1x128xf32, #tpu.memory_space<vmem>>, vector<1x1x128xf32>
    %134 = vector.shape_cast %133 : vector<1x1x128xf32> to vector<1x128xf32>
    %cst_60 = arith.constant dense<0.000000e+00> : vector<20x128xf32>
    %135 = tpu.matmul %130, %132, %cst_60 {dimension_numbers = #tpu.dot_dimension_numbers<[1], [0], [0], [1], [0, 0, 1, 1], [], []>} : vector<20x64xf32>, vector<64x128xf32>, vector<20x128xf32> -> vector<20x128xf32>
    %136 = vector.broadcast %134 : vector<1x128xf32> to vector<20x128xf32>
    %137 = arith.addf %135, %136 : vector<20x128xf32>
    %cst_61 = arith.constant 0.000000e+00 : f32
    %138 = vector.broadcast %cst_61 : f32 to vector<20x128xf32>
    %139 = arith.maximumf %137, %138 : vector<20x128xf32>
    %c0_62 = arith.constant 0 : index
    %c0_63 = arith.constant 0 : index
    %c0_64 = arith.constant 0 : index
    %140 = vector.load %arg12[%c0_62, %c0_63, %c0_64] : memref<2x128x64xf32, #tpu.memory_space<vmem>>, vector<1x128x64xf32>
    %141 = vector.shape_cast %140 : vector<1x128x64xf32> to vector<128x64xf32>
    %c0_65 = arith.constant 0 : index
    %c0_66 = arith.constant 0 : index
    %c0_67 = arith.constant 0 : index
    %142 = vector.load %arg13[%c0_65, %c0_66, %c0_67] : memref<2x1x64xf32, #tpu.memory_space<vmem>>, vector<1x1x64xf32>
    %143 = vector.shape_cast %142 : vector<1x1x64xf32> to vector<1x64xf32>
    %cst_68 = arith.constant dense<0.000000e+00> : vector<20x64xf32>
    %144 = tpu.matmul %139, %141, %cst_68 {dimension_numbers = #tpu.dot_dimension_numbers<[1], [0], [0], [1], [0, 0, 1, 1], [], []>} : vector<20x128xf32>, vector<128x64xf32>, vector<20x64xf32> -> vector<20x64xf32>
    %145 = vector.broadcast %143 : vector<1x64xf32> to vector<20x64xf32>
    %146 = arith.addf %144, %145 : vector<20x64xf32>
    %147 = arith.addf %130, %146 : vector<20x64xf32>
    %c0_69 = arith.constant 0 : index
    %c0_70 = arith.constant 0 : index
    %c0_71 = arith.constant 0 : index
    %148 = vector.load %arg16[%c0_69, %c0_70, %c0_71] : memref<2x1x64xf32, #tpu.memory_space<vmem>>, vector<1x1x64xf32>
    %149 = vector.shape_cast %148 : vector<1x1x64xf32> to vector<1x64xf32>
    %c0_72 = arith.constant 0 : index
    %c0_73 = arith.constant 0 : index
    %c0_74 = arith.constant 0 : index
    %150 = vector.load %arg17[%c0_72, %c0_73, %c0_74] : memref<2x1x64xf32, #tpu.memory_space<vmem>>, vector<1x1x64xf32>
    %151 = vector.shape_cast %150 : vector<1x1x64xf32> to vector<1x64xf32>
    %cst_75 = arith.constant dense<0.000000e+00> : vector<20xf32>
    %152 = vector.multi_reduction <add>, %147, %cst_75 [1] : vector<20x64xf32> to vector<20xf32>
    %153 = vector.shape_cast %152 : vector<20xf32> to vector<20x1xf32>
    %cst_76 = arith.constant 6.400000e+01 : f32
    %154 = vector.broadcast %cst_76 : f32 to vector<20x1xf32>
    %155 = arith.divf %153, %154 : vector<20x1xf32>
    %156 = vector.broadcast %155 : vector<20x1xf32> to vector<20x64xf32>
    %157 = arith.subf %147, %156 : vector<20x64xf32>
    %158 = arith.mulf %157, %157 : vector<20x64xf32>
    %cst_77 = arith.constant dense<0.000000e+00> : vector<20xf32>
    %159 = vector.multi_reduction <add>, %158, %cst_77 [1] : vector<20x64xf32> to vector<20xf32>
    %160 = vector.shape_cast %159 : vector<20xf32> to vector<20x1xf32>
    %cst_78 = arith.constant 6.400000e+01 : f32
    %161 = vector.broadcast %cst_78 : f32 to vector<20x1xf32>
    %162 = arith.divf %160, %161 : vector<20x1xf32>
    %cst_79 = arith.constant 9.99999974E-6 : f32
    %163 = vector.broadcast %cst_79 : f32 to vector<20x1xf32>
    %164 = arith.addf %162, %163 : vector<20x1xf32>
    %165 = math.rsqrt %164 : vector<20x1xf32>
    %166 = vector.broadcast %165 : vector<20x1xf32> to vector<20x64xf32>
    %167 = arith.mulf %157, %166 : vector<20x64xf32>
    %168 = vector.broadcast %149 : vector<1x64xf32> to vector<20x64xf32>
    %169 = arith.mulf %167, %168 : vector<20x64xf32>
    %170 = vector.broadcast %151 : vector<1x64xf32> to vector<20x64xf32>
    %171 = arith.addf %169, %170 : vector<20x64xf32>
    %c1 = arith.constant 1 : index
    %c0_80 = arith.constant 0 : index
    %c0_81 = arith.constant 0 : index
    %172 = vector.load %arg6[%c1, %c0_80, %c0_81] : memref<2x64x192xf32, #tpu.memory_space<vmem>>, vector<1x64x192xf32>
    %173 = vector.shape_cast %172 : vector<1x64x192xf32> to vector<64x192xf32>
    %c1_82 = arith.constant 1 : index
    %c0_83 = arith.constant 0 : index
    %c0_84 = arith.constant 0 : index
    %174 = vector.load %arg7[%c1_82, %c0_83, %c0_84] : memref<2x1x192xf32, #tpu.memory_space<vmem>>, vector<1x1x192xf32>
    %175 = vector.shape_cast %174 : vector<1x1x192xf32> to vector<1x192xf32>
    %cst_85 = arith.constant dense<0.000000e+00> : vector<20x192xf32>
    %176 = tpu.matmul %171, %173, %cst_85 {dimension_numbers = #tpu.dot_dimension_numbers<[1], [0], [0], [1], [0, 0, 1, 1], [], []>} : vector<20x64xf32>, vector<64x192xf32>, vector<20x192xf32> -> vector<20x192xf32>
    %177 = vector.broadcast %175 : vector<1x192xf32> to vector<20x192xf32>
    %178 = arith.addf %176, %177 : vector<20x192xf32>
    %179 = vector.extract_strided_slice %178 {offsets = [0, 0], sizes = [20, 64], strides = [1, 1]} : vector<20x192xf32> to vector<20x64xf32>
    %cst_86 = arith.constant 2.500000e-01 : f32
    %180 = vector.broadcast %cst_86 : f32 to vector<20x64xf32>
    %181 = arith.mulf %179, %180 : vector<20x64xf32>
    %182 = vector.extract_strided_slice %178 {offsets = [0, 64], sizes = [20, 64], strides = [1, 1]} : vector<20x192xf32> to vector<20x64xf32>
    %183 = vector.extract_strided_slice %178 {offsets = [0, 128], sizes = [20, 64], strides = [1, 1]} : vector<20x192xf32> to vector<20x64xf32>
    %cst_87 = arith.constant 0.000000e+00 : f32
    %184 = vector.broadcast %cst_87 : f32 to vector<20x64xf32>
    %185 = vector.broadcast %2 : vector<1x64xf32> to vector<20x64xf32>
    %186 = arith.mulf %181, %185 : vector<20x64xf32>
    %cst_88 = arith.constant dense<0.000000e+00> : vector<20x20xf32>
    %187 = tpu.matmul %186, %182, %cst_88 {dimension_numbers = #tpu.dot_dimension_numbers<[1], [1], [0], [0], [0, 0, 1, 0], [], []>} : vector<20x64xf32>, vector<20x64xf32>, vector<20x20xf32> -> vector<20x20xf32>
    %188 = arith.addf %187, %0 : vector<20x20xf32>
    %cst_89 = arith.constant dense<0xFF800000> : vector<20xf32>
    %189 = vector.multi_reduction <maximumf>, %188, %cst_89 [1] : vector<20x20xf32> to vector<20xf32>
    %190 = vector.shape_cast %189 : vector<20xf32> to vector<20x1xf32>
    %191 = vector.broadcast %190 : vector<20x1xf32> to vector<20x20xf32>
    %192 = arith.subf %188, %191 : vector<20x20xf32>
    %193 = math.exp %192 : vector<20x20xf32>
    %cst_90 = arith.constant dense<0.000000e+00> : vector<20xf32>
    %194 = vector.multi_reduction <add>, %193, %cst_90 [1] : vector<20x20xf32> to vector<20xf32>
    %195 = vector.shape_cast %194 : vector<20xf32> to vector<20x1xf32>
    %196 = tpu.reciprocal %195 {approx = true} : vector<20x1xf32> -> vector<20x1xf32>
    %197 = vector.broadcast %196 : vector<20x1xf32> to vector<20x20xf32>
    %198 = arith.mulf %193, %197 : vector<20x20xf32>
    %199 = vector.broadcast %2 : vector<1x64xf32> to vector<20x64xf32>
    %200 = arith.mulf %183, %199 : vector<20x64xf32>
    %cst_91 = arith.constant dense<0.000000e+00> : vector<20x64xf32>
    %201 = tpu.matmul %198, %200, %cst_91 {dimension_numbers = #tpu.dot_dimension_numbers<[1], [0], [0], [1], [0, 0, 1, 1], [], []>} : vector<20x20xf32>, vector<20x64xf32>, vector<20x64xf32> -> vector<20x64xf32>
    %202 = arith.addf %184, %201 : vector<20x64xf32>
    %203 = vector.broadcast %3 : vector<1x64xf32> to vector<20x64xf32>
    %204 = arith.mulf %181, %203 : vector<20x64xf32>
    %cst_92 = arith.constant dense<0.000000e+00> : vector<20x20xf32>
    %205 = tpu.matmul %204, %182, %cst_92 {dimension_numbers = #tpu.dot_dimension_numbers<[1], [1], [0], [0], [0, 0, 1, 0], [], []>} : vector<20x64xf32>, vector<20x64xf32>, vector<20x20xf32> -> vector<20x20xf32>
    %206 = arith.addf %205, %0 : vector<20x20xf32>
    %cst_93 = arith.constant dense<0xFF800000> : vector<20xf32>
    %207 = vector.multi_reduction <maximumf>, %206, %cst_93 [1] : vector<20x20xf32> to vector<20xf32>
    %208 = vector.shape_cast %207 : vector<20xf32> to vector<20x1xf32>
    %209 = vector.broadcast %208 : vector<20x1xf32> to vector<20x20xf32>
    %210 = arith.subf %206, %209 : vector<20x20xf32>
    %211 = math.exp %210 : vector<20x20xf32>
    %cst_94 = arith.constant dense<0.000000e+00> : vector<20xf32>
    %212 = vector.multi_reduction <add>, %211, %cst_94 [1] : vector<20x20xf32> to vector<20xf32>
    %213 = vector.shape_cast %212 : vector<20xf32> to vector<20x1xf32>
    %214 = tpu.reciprocal %213 {approx = true} : vector<20x1xf32> -> vector<20x1xf32>
    %215 = vector.broadcast %214 : vector<20x1xf32> to vector<20x20xf32>
    %216 = arith.mulf %211, %215 : vector<20x20xf32>
    %217 = vector.broadcast %3 : vector<1x64xf32> to vector<20x64xf32>
    %218 = arith.mulf %183, %217 : vector<20x64xf32>
    %cst_95 = arith.constant dense<0.000000e+00> : vector<20x64xf32>
    %219 = tpu.matmul %216, %218, %cst_95 {dimension_numbers = #tpu.dot_dimension_numbers<[1], [0], [0], [1], [0, 0, 1, 1], [], []>} : vector<20x20xf32>, vector<20x64xf32>, vector<20x64xf32> -> vector<20x64xf32>
    %220 = arith.addf %202, %219 : vector<20x64xf32>
    %221 = vector.broadcast %4 : vector<1x64xf32> to vector<20x64xf32>
    %222 = arith.mulf %181, %221 : vector<20x64xf32>
    %cst_96 = arith.constant dense<0.000000e+00> : vector<20x20xf32>
    %223 = tpu.matmul %222, %182, %cst_96 {dimension_numbers = #tpu.dot_dimension_numbers<[1], [1], [0], [0], [0, 0, 1, 0], [], []>} : vector<20x64xf32>, vector<20x64xf32>, vector<20x20xf32> -> vector<20x20xf32>
    %224 = arith.addf %223, %0 : vector<20x20xf32>
    %cst_97 = arith.constant dense<0xFF800000> : vector<20xf32>
    %225 = vector.multi_reduction <maximumf>, %224, %cst_97 [1] : vector<20x20xf32> to vector<20xf32>
    %226 = vector.shape_cast %225 : vector<20xf32> to vector<20x1xf32>
    %227 = vector.broadcast %226 : vector<20x1xf32> to vector<20x20xf32>
    %228 = arith.subf %224, %227 : vector<20x20xf32>
    %229 = math.exp %228 : vector<20x20xf32>
    %cst_98 = arith.constant dense<0.000000e+00> : vector<20xf32>
    %230 = vector.multi_reduction <add>, %229, %cst_98 [1] : vector<20x20xf32> to vector<20xf32>
    %231 = vector.shape_cast %230 : vector<20xf32> to vector<20x1xf32>
    %232 = tpu.reciprocal %231 {approx = true} : vector<20x1xf32> -> vector<20x1xf32>
    %233 = vector.broadcast %232 : vector<20x1xf32> to vector<20x20xf32>
    %234 = arith.mulf %229, %233 : vector<20x20xf32>
    %235 = vector.broadcast %4 : vector<1x64xf32> to vector<20x64xf32>
    %236 = arith.mulf %183, %235 : vector<20x64xf32>
    %cst_99 = arith.constant dense<0.000000e+00> : vector<20x64xf32>
    %237 = tpu.matmul %234, %236, %cst_99 {dimension_numbers = #tpu.dot_dimension_numbers<[1], [0], [0], [1], [0, 0, 1, 1], [], []>} : vector<20x20xf32>, vector<20x64xf32>, vector<20x64xf32> -> vector<20x64xf32>
    %238 = arith.addf %220, %237 : vector<20x64xf32>
    %239 = vector.broadcast %5 : vector<1x64xf32> to vector<20x64xf32>
    %240 = arith.mulf %181, %239 : vector<20x64xf32>
    %cst_100 = arith.constant dense<0.000000e+00> : vector<20x20xf32>
    %241 = tpu.matmul %240, %182, %cst_100 {dimension_numbers = #tpu.dot_dimension_numbers<[1], [1], [0], [0], [0, 0, 1, 0], [], []>} : vector<20x64xf32>, vector<20x64xf32>, vector<20x20xf32> -> vector<20x20xf32>
    %242 = arith.addf %241, %0 : vector<20x20xf32>
    %cst_101 = arith.constant dense<0xFF800000> : vector<20xf32>
    %243 = vector.multi_reduction <maximumf>, %242, %cst_101 [1] : vector<20x20xf32> to vector<20xf32>
    %244 = vector.shape_cast %243 : vector<20xf32> to vector<20x1xf32>
    %245 = vector.broadcast %244 : vector<20x1xf32> to vector<20x20xf32>
    %246 = arith.subf %242, %245 : vector<20x20xf32>
    %247 = math.exp %246 : vector<20x20xf32>
    %cst_102 = arith.constant dense<0.000000e+00> : vector<20xf32>
    %248 = vector.multi_reduction <add>, %247, %cst_102 [1] : vector<20x20xf32> to vector<20xf32>
    %249 = vector.shape_cast %248 : vector<20xf32> to vector<20x1xf32>
    %250 = tpu.reciprocal %249 {approx = true} : vector<20x1xf32> -> vector<20x1xf32>
    %251 = vector.broadcast %250 : vector<20x1xf32> to vector<20x20xf32>
    %252 = arith.mulf %247, %251 : vector<20x20xf32>
    %253 = vector.broadcast %5 : vector<1x64xf32> to vector<20x64xf32>
    %254 = arith.mulf %183, %253 : vector<20x64xf32>
    %cst_103 = arith.constant dense<0.000000e+00> : vector<20x64xf32>
    %255 = tpu.matmul %252, %254, %cst_103 {dimension_numbers = #tpu.dot_dimension_numbers<[1], [0], [0], [1], [0, 0, 1, 1], [], []>} : vector<20x20xf32>, vector<20x64xf32>, vector<20x64xf32> -> vector<20x64xf32>
    %256 = arith.addf %238, %255 : vector<20x64xf32>
    %c1_104 = arith.constant 1 : index
    %c0_105 = arith.constant 0 : index
    %c0_106 = arith.constant 0 : index
    %257 = vector.load %arg8[%c1_104, %c0_105, %c0_106] : memref<2x64x64xf32, #tpu.memory_space<vmem>>, vector<1x64x64xf32>
    %258 = vector.shape_cast %257 : vector<1x64x64xf32> to vector<64x64xf32>
    %c1_107 = arith.constant 1 : index
    %c0_108 = arith.constant 0 : index
    %c0_109 = arith.constant 0 : index
    %259 = vector.load %arg9[%c1_107, %c0_108, %c0_109] : memref<2x1x64xf32, #tpu.memory_space<vmem>>, vector<1x1x64xf32>
    %260 = vector.shape_cast %259 : vector<1x1x64xf32> to vector<1x64xf32>
    %cst_110 = arith.constant dense<0.000000e+00> : vector<20x64xf32>
    %261 = tpu.matmul %256, %258, %cst_110 {dimension_numbers = #tpu.dot_dimension_numbers<[1], [0], [0], [1], [0, 0, 1, 1], [], []>} : vector<20x64xf32>, vector<64x64xf32>, vector<20x64xf32> -> vector<20x64xf32>
    %262 = vector.broadcast %260 : vector<1x64xf32> to vector<20x64xf32>
    %263 = arith.addf %261, %262 : vector<20x64xf32>
    %264 = arith.addf %171, %263 : vector<20x64xf32>
    %c1_111 = arith.constant 1 : index
    %c0_112 = arith.constant 0 : index
    %c0_113 = arith.constant 0 : index
    %265 = vector.load %arg14[%c1_111, %c0_112, %c0_113] : memref<2x1x64xf32, #tpu.memory_space<vmem>>, vector<1x1x64xf32>
    %266 = vector.shape_cast %265 : vector<1x1x64xf32> to vector<1x64xf32>
    %c1_114 = arith.constant 1 : index
    %c0_115 = arith.constant 0 : index
    %c0_116 = arith.constant 0 : index
    %267 = vector.load %arg15[%c1_114, %c0_115, %c0_116] : memref<2x1x64xf32, #tpu.memory_space<vmem>>, vector<1x1x64xf32>
    %268 = vector.shape_cast %267 : vector<1x1x64xf32> to vector<1x64xf32>
    %cst_117 = arith.constant dense<0.000000e+00> : vector<20xf32>
    %269 = vector.multi_reduction <add>, %264, %cst_117 [1] : vector<20x64xf32> to vector<20xf32>
    %270 = vector.shape_cast %269 : vector<20xf32> to vector<20x1xf32>
    %cst_118 = arith.constant 6.400000e+01 : f32
    %271 = vector.broadcast %cst_118 : f32 to vector<20x1xf32>
    %272 = arith.divf %270, %271 : vector<20x1xf32>
    %273 = vector.broadcast %272 : vector<20x1xf32> to vector<20x64xf32>
    %274 = arith.subf %264, %273 : vector<20x64xf32>
    %275 = arith.mulf %274, %274 : vector<20x64xf32>
    %cst_119 = arith.constant dense<0.000000e+00> : vector<20xf32>
    %276 = vector.multi_reduction <add>, %275, %cst_119 [1] : vector<20x64xf32> to vector<20xf32>
    %277 = vector.shape_cast %276 : vector<20xf32> to vector<20x1xf32>
    %cst_120 = arith.constant 6.400000e+01 : f32
    %278 = vector.broadcast %cst_120 : f32 to vector<20x1xf32>
    %279 = arith.divf %277, %278 : vector<20x1xf32>
    %cst_121 = arith.constant 9.99999974E-6 : f32
    %280 = vector.broadcast %cst_121 : f32 to vector<20x1xf32>
    %281 = arith.addf %279, %280 : vector<20x1xf32>
    %282 = math.rsqrt %281 : vector<20x1xf32>
    %283 = vector.broadcast %282 : vector<20x1xf32> to vector<20x64xf32>
    %284 = arith.mulf %274, %283 : vector<20x64xf32>
    %285 = vector.broadcast %266 : vector<1x64xf32> to vector<20x64xf32>
    %286 = arith.mulf %284, %285 : vector<20x64xf32>
    %287 = vector.broadcast %268 : vector<1x64xf32> to vector<20x64xf32>
    %288 = arith.addf %286, %287 : vector<20x64xf32>
    %c1_122 = arith.constant 1 : index
    %c0_123 = arith.constant 0 : index
    %c0_124 = arith.constant 0 : index
    %289 = vector.load %arg10[%c1_122, %c0_123, %c0_124] : memref<2x64x128xf32, #tpu.memory_space<vmem>>, vector<1x64x128xf32>
    %290 = vector.shape_cast %289 : vector<1x64x128xf32> to vector<64x128xf32>
    %c1_125 = arith.constant 1 : index
    %c0_126 = arith.constant 0 : index
    %c0_127 = arith.constant 0 : index
    %291 = vector.load %arg11[%c1_125, %c0_126, %c0_127] : memref<2x1x128xf32, #tpu.memory_space<vmem>>, vector<1x1x128xf32>
    %292 = vector.shape_cast %291 : vector<1x1x128xf32> to vector<1x128xf32>
    %cst_128 = arith.constant dense<0.000000e+00> : vector<20x128xf32>
    %293 = tpu.matmul %288, %290, %cst_128 {dimension_numbers = #tpu.dot_dimension_numbers<[1], [0], [0], [1], [0, 0, 1, 1], [], []>} : vector<20x64xf32>, vector<64x128xf32>, vector<20x128xf32> -> vector<20x128xf32>
    %294 = vector.broadcast %292 : vector<1x128xf32> to vector<20x128xf32>
    %295 = arith.addf %293, %294 : vector<20x128xf32>
    %cst_129 = arith.constant 0.000000e+00 : f32
    %296 = vector.broadcast %cst_129 : f32 to vector<20x128xf32>
    %297 = arith.maximumf %295, %296 : vector<20x128xf32>
    %c1_130 = arith.constant 1 : index
    %c0_131 = arith.constant 0 : index
    %c0_132 = arith.constant 0 : index
    %298 = vector.load %arg12[%c1_130, %c0_131, %c0_132] : memref<2x128x64xf32, #tpu.memory_space<vmem>>, vector<1x128x64xf32>
    %299 = vector.shape_cast %298 : vector<1x128x64xf32> to vector<128x64xf32>
    %c1_133 = arith.constant 1 : index
    %c0_134 = arith.constant 0 : index
    %c0_135 = arith.constant 0 : index
    %300 = vector.load %arg13[%c1_133, %c0_134, %c0_135] : memref<2x1x64xf32, #tpu.memory_space<vmem>>, vector<1x1x64xf32>
    %301 = vector.shape_cast %300 : vector<1x1x64xf32> to vector<1x64xf32>
    %cst_136 = arith.constant dense<0.000000e+00> : vector<20x64xf32>
    %302 = tpu.matmul %297, %299, %cst_136 {dimension_numbers = #tpu.dot_dimension_numbers<[1], [0], [0], [1], [0, 0, 1, 1], [], []>} : vector<20x128xf32>, vector<128x64xf32>, vector<20x64xf32> -> vector<20x64xf32>
    %303 = vector.broadcast %301 : vector<1x64xf32> to vector<20x64xf32>
    %304 = arith.addf %302, %303 : vector<20x64xf32>
    %305 = arith.addf %288, %304 : vector<20x64xf32>
    %c1_137 = arith.constant 1 : index
    %c0_138 = arith.constant 0 : index
    %c0_139 = arith.constant 0 : index
    %306 = vector.load %arg16[%c1_137, %c0_138, %c0_139] : memref<2x1x64xf32, #tpu.memory_space<vmem>>, vector<1x1x64xf32>
    %307 = vector.shape_cast %306 : vector<1x1x64xf32> to vector<1x64xf32>
    %c1_140 = arith.constant 1 : index
    %c0_141 = arith.constant 0 : index
    %c0_142 = arith.constant 0 : index
    %308 = vector.load %arg17[%c1_140, %c0_141, %c0_142] : memref<2x1x64xf32, #tpu.memory_space<vmem>>, vector<1x1x64xf32>
    %309 = vector.shape_cast %308 : vector<1x1x64xf32> to vector<1x64xf32>
    %cst_143 = arith.constant dense<0.000000e+00> : vector<20xf32>
    %310 = vector.multi_reduction <add>, %305, %cst_143 [1] : vector<20x64xf32> to vector<20xf32>
    %311 = vector.shape_cast %310 : vector<20xf32> to vector<20x1xf32>
    %cst_144 = arith.constant 6.400000e+01 : f32
    %312 = vector.broadcast %cst_144 : f32 to vector<20x1xf32>
    %313 = arith.divf %311, %312 : vector<20x1xf32>
    %314 = vector.broadcast %313 : vector<20x1xf32> to vector<20x64xf32>
    %315 = arith.subf %305, %314 : vector<20x64xf32>
    %316 = arith.mulf %315, %315 : vector<20x64xf32>
    %cst_145 = arith.constant dense<0.000000e+00> : vector<20xf32>
    %317 = vector.multi_reduction <add>, %316, %cst_145 [1] : vector<20x64xf32> to vector<20xf32>
    %318 = vector.shape_cast %317 : vector<20xf32> to vector<20x1xf32>
    %cst_146 = arith.constant 6.400000e+01 : f32
    %319 = vector.broadcast %cst_146 : f32 to vector<20x1xf32>
    %320 = arith.divf %318, %319 : vector<20x1xf32>
    %cst_147 = arith.constant 9.99999974E-6 : f32
    %321 = vector.broadcast %cst_147 : f32 to vector<20x1xf32>
    %322 = arith.addf %320, %321 : vector<20x1xf32>
    %323 = math.rsqrt %322 : vector<20x1xf32>
    %324 = vector.broadcast %323 : vector<20x1xf32> to vector<20x64xf32>
    %325 = arith.mulf %315, %324 : vector<20x64xf32>
    %326 = vector.broadcast %307 : vector<1x64xf32> to vector<20x64xf32>
    %327 = arith.mulf %325, %326 : vector<20x64xf32>
    %328 = vector.broadcast %309 : vector<1x64xf32> to vector<20x64xf32>
    %329 = arith.addf %327, %328 : vector<20x64xf32>
    %c0_148 = arith.constant 0 : index
    %c0_149 = arith.constant 0 : index
    %330 = vector.load %arg18[%c0_148, %c0_149] : memref<1x64xf32, #tpu.memory_space<vmem>>, vector<1x64xf32>
    %c0_150 = arith.constant 0 : index
    %c0_151 = arith.constant 0 : index
    %331 = vector.load %arg19[%c0_150, %c0_151] : memref<1x64xf32, #tpu.memory_space<vmem>>, vector<1x64xf32>
    %cst_152 = arith.constant dense<0.000000e+00> : vector<20xf32>
    %332 = vector.multi_reduction <add>, %329, %cst_152 [1] : vector<20x64xf32> to vector<20xf32>
    %333 = vector.shape_cast %332 : vector<20xf32> to vector<20x1xf32>
    %cst_153 = arith.constant 6.400000e+01 : f32
    %334 = vector.broadcast %cst_153 : f32 to vector<20x1xf32>
    %335 = arith.divf %333, %334 : vector<20x1xf32>
    %336 = vector.broadcast %335 : vector<20x1xf32> to vector<20x64xf32>
    %337 = arith.subf %329, %336 : vector<20x64xf32>
    %338 = arith.mulf %337, %337 : vector<20x64xf32>
    %cst_154 = arith.constant dense<0.000000e+00> : vector<20xf32>
    %339 = vector.multi_reduction <add>, %338, %cst_154 [1] : vector<20x64xf32> to vector<20xf32>
    %340 = vector.shape_cast %339 : vector<20xf32> to vector<20x1xf32>
    %cst_155 = arith.constant 6.400000e+01 : f32
    %341 = vector.broadcast %cst_155 : f32 to vector<20x1xf32>
    %342 = arith.divf %340, %341 : vector<20x1xf32>
    %cst_156 = arith.constant 9.99999974E-6 : f32
    %343 = vector.broadcast %cst_156 : f32 to vector<20x1xf32>
    %344 = arith.addf %342, %343 : vector<20x1xf32>
    %345 = math.rsqrt %344 : vector<20x1xf32>
    %346 = vector.broadcast %345 : vector<20x1xf32> to vector<20x64xf32>
    %347 = arith.mulf %337, %346 : vector<20x64xf32>
    %348 = vector.broadcast %330 : vector<1x64xf32> to vector<20x64xf32>
    %349 = arith.mulf %347, %348 : vector<20x64xf32>
    %350 = vector.broadcast %331 : vector<1x64xf32> to vector<20x64xf32>
    %351 = arith.addf %349, %350 : vector<20x64xf32>
    %c0_157 = arith.constant 0 : index
    %c0_158 = arith.constant 0 : index
    %352 = vector.load %arg20[%c0_157, %c0_158] : memref<20x64xf32, #tpu.memory_space<vmem>>, vector<20x64xf32>
    tpu.vector_store %arg20[%c0_157, %c0_158], %351 {strides = array<i32>} : memref<20x64xf32, #tpu.memory_space<vmem>>, vector<20x64xf32>,
    return
  }
}

</mosaic_0001>

<bundles_post_ra>
// kernel: local_feature_encoder.1
= control target key start
LH: loop header
LB: loop body
LE: loop exit
PB: predicated region body
PF: predicated region fallthrough
CT: control target
= control target key end

     0   :  { %s3258_s0 = inlined_call_operand.vmem [shape: f32[20,8], index: 0, kind: input, shape index: {}]   ;;  %s3259_s1 = inlined_call_operand.vmem [shape: f32[20,64], index: 1, kind: input, shape index: {}]   ;;  %s3260_s2 = inlined_call_operand.vmem [shape: f32[20,20], index: 2, kind: input, shape index: {}]   ;;  %s3261_s3 = inlined_call_operand.vmem [shape: f32[4,64], index: 3, kind: input, shape index: {}]   ;;  %s3262_s4 = inlined_call_operand.vmem [shape: f32[8,64], index: 4, kind: input, shape index: {}]   ;;  %s3263_s5 = inlined_call_operand.vmem [shape: f32[1,64], index: 5, kind: input, shape index: {}]   ;;  %s3264_s6 = inlined_call_operand.vmem [shape: f32[2,64,192], index: 6, kind: input, shape index: {}]   ;;  %s3265_s7 = inlined_call_operand.vmem [shape: f32[2,1,192], index: 7, kind: input, shape index: {}]   ;;  %s3266_s8 = inlined_call_operand.vmem [shape: f32[2,64,64], index: 8, kind: input, shape index: {}]   ;;  %s3267_s9 = inlined_call_operand.vmem [shape: f32[2,1,64], index: 9, kind: input, shape index: {}]   ;;  %s3268_s10 = inlined_call_operand.hbm [shape: f32[2,64,128], index: 10, kind: input, shape index: {}]   ;;  %s3269_s11 = inlined_call_operand.vmem [shape: f32[2,1,128], index: 11, kind: input, shape index: {}]   ;;  %s3270_s12 = inlined_call_operand.vmem [shape: f32[2,128,64], index: 12, kind: input, shape index: {}]   ;;  %s3271_s13 = inlined_call_operand.vmem [shape: f32[2,1,64], index: 13, kind: input, shape index: {}]   ;;  %s3272_s14 = inlined_call_operand.vmem [shape: f32[2,1,64], index: 14, kind: input, shape index: {}]   ;;  %s3273_s15 = inlined_call_operand.vmem [shape: f32[2,1,64], index: 15, kind: input, shape index: {}]   ;;  %s3274_s16 = inlined_call_operand.vmem [shape: f32[2,1,64], index: 16, kind: input, shape index: {}]   ;;  %s3275_s17 = inlined_call_operand.vmem [shape: f32[2,1,64], index: 17, kind: input, shape index: {}]   ;;  %s3276_s18 = inlined_call_operand.vmem [shape: f32[1,64], index: 18, kind: input, shape index: {}]   ;;  %s3277_s19 = inlined_call_operand.vmem [shape: f32[1,64], index: 19, kind: input, shape index: {}]   ;;  %s3278_s20 = inlined_call_operand.vmem [shape: f32[20,64], index: 20, kind: output, shape index: {}]  }
   0x1   :  { %3282 = sst [smem:[#allocation5_spill]] %s3258_s0 }
   0x2   :  { %3283 = sst [smem:[#allocation6_spill]] %s3259_s1 }
   0x3   :  { %3284 = sst [smem:[#allocation7_spill]] %s3260_s2 }
   0x4   :  { %3285 = sst [smem:[#allocation8_spill]] %s3261_s3 }
   0x5   :  { %3286 = sst [smem:[#allocation9_spill]] %s3262_s4 }
   0x6   :  { %25 = vsyncpa [#allocation3], 0  ;;  %s50_s23 = sshll.u32 %s3268_s10, 4  ;;  %s2330_s24 = smov [#allocation2]   ;;  %s51_s23 = int_to_ptr.hbm [resolvable:$true] %s50_s23 }
   0x7   :  { %s52_s2 = sshll.u32 %s2330_s24, 4  ;;  %s2331_s25 = smov 128   ;;  %s53_s2 = int_to_ptr.vmem [resolvable:$true] %s52_s2 }
   0x8   :  { %s2332_s3 = smov 8  }
   0x9   :  { %58 = dma.hbm_to_vmem [thread:$0]  %s51_s23, 2048, %s53_s2, [#allocation3], %s2331_s25, %s2331_s25, %s2332_s3  }
   0xa   :  { %2328 = dma.done.wait [#allocation3], 2048  }
   0xb   :  { %2329 = vsyncadd [#allocation3], 4294965248  ;;  %vm93_vm0 = vcmask 64512   ;;  %s3287_s28 = sld [smem:[#allocation9_spill]]  ;;  %v149_v3 = vld [vmem:[%s3264_s6 + $0x70] sm:$0xff]  ;;  %v150_v4 = vld [vmem:[%s3264_s6 + $0x78] sm:$0xff] }
   0xc   :  { %s3288_s30 = sld [smem:[#allocation5_spill]]  ;;  %v147_v5 = vld [vmem:[%s3264_s6 + $0x60] sm:$0xff]  ;;  %v148_v6 = vld [vmem:[%s3264_s6 + $0x68] sm:$0xff]  ;;  %201 = vmatpush.msra.mxu2 %v150_v4  ;;  %v145_v7 = vld [vmem:[%s3264_s6 + $0x50] sm:$0xff]  ;;  %vm157_vm1 = vcmask 523264   ;;  %s2333_s29 = smov 64  }
   0xd   :  { %v146_v8 = vld [vmem:[%s3264_s6 + $0x58] sm:$0xff]  ;;  %v143_v9 = vld [vmem:[%s3264_s6 + $0x40] sm:$0xff]  ;;  %v144_v11 = vld [vmem:[%s3264_s6 + $0x48] sm:$0xff]  ;;  %s3290_s21 = sld [smem:[#allocation8_spill]]  ;;  %vm398_vm2 = vcmask 1043456   ;;  %vm276_vm3 = vcmask 162816  }
   0xe   :  { %202 = vmatpush.msra.mxu2 %v148_v6  ;;  %v141_v12 = vld [vmem:[%s3264_s6 + $0x30] sm:$0xff]  ;;  %v142_v13 = vld [vmem:[%s3264_s6 + $0x38] sm:$0xff]  ;;  %v139_v14 = vld [vmem:[%s3264_s6 + $0x20] sm:$0xff]  ;;  %s3291_s23 = sld [smem:[#allocation7_spill]]  ;;  %vm283_vm4 = vcmask 158720   ;;  %vm756_vm5 = vcmask 519168  }
   0xf   :  { %v140_v15 = vld [vmem:[%s3264_s6 + $0x28] sm:$0xff]  ;;  %v137_v16 = vld [vmem:[%s3264_s6 + $0x10] sm:$0xff]  ;;  %v138_v17 = vld [vmem:[%s3264_s6 + $0x18] sm:$0xff] }
  0x10   :  { %203 = vmatpush.msra.mxu2 %v146_v8  ;;  %v135_v18 = vld [vmem:[%s3264_s6] sm:$0xff]  ;;  %v136_v19 = vld [vmem:[%s3264_s6 + $0x8] sm:$0xff] }
  0x11   :  { %v88_v0 = vld [vmem:[%s3287_s28] sm:$0xff] }
  0x12   :  { %v85_v1 = vld [vmem:[%s3288_s30] sm:$0xff]  ;;  %118 = vmatpush.msra.mxu0 %v88_v0  ;;  %2134 = vmatpush.msra.mxu1 %v88_v0  ;;  %v87_v2 = vld [vmem:[%s3288_s30 + $0x10] sm:$0xf]  ;;  %v86_v10 = vld [vmem:[%s3288_s30 + $0x8] sm:$0xff]  ;;  %s3289_s30 = sld [smem:[#allocation6_spill]] }
  0x13   :  { %1979 = vmatmul.msk.f32.vlgmr.msra.gmra.mxu0 %vm93_vm0, %v85_v1  ;;  %1981 = vmatmul.msk.f32.vlgmr.msra.gmra.mxu1 %vm93_vm0, %v87_v2  ;;  %v2156_v20 = vld [vmem:[%s3263_s5] ss:$0 sm:$0xff] }
  0x14   :  { %175 = vmatpush.msrb.mxu1 %v149_v3  ;;  %204 = vmatpush.msra.mxu2 %v144_v11  ;;  %v151_v33 = vld [vmem:[%s3265_s7] sm:$0x3] }
  0x15   :  { %v153_v34 = vperm.slane %v151_v33, 0  ;;  %v84_v42 = vld [vmem:[%s3290_s21] sm:$0xf]  ;;  %v154_v43 = vperm.slane %v151_v33, 1 }
  0x16   :  { %176 = vmatpush.msrb.mxu1 %v147_v5  ;;  %205 = vmatpush.msra.mxu2 %v142_v13  ;;  %v2547_v47 = vperm.slane %v84_v42, 0  ;;  %v2553_v52 = vperm.slane %v84_v42, 3  ;;  %v2568_v60 = vperm.slane %v84_v42, 1  ;;  %v2570_v61 = vperm.slane %v84_v42, 2 }
  0x18   :  { %177 = vmatpush.msrb.mxu1 %v145_v7  ;;  %206 = vmatpush.msra.mxu2 %v140_v15  ;;  %v129_v22 = vld [vmem:[%s3289_s30] sm:$0xff]  ;;  %v130_v26 = vld [vmem:[%s3289_s30 + $0x8] sm:$0xff]  ;;  %v131_v31 = vld [vmem:[%s3289_s30 + $0x10] sm:$0xf] }
  0x1a   :  { %178 = vmatpush.msrb.mxu1 %v143_v9  ;;  %207 = vmatpush.msra.mxu2 %v138_v17 }
  0x1b   :  { %1980 = vmatmul.msk.f32.gmra.mxu0 %vm93_vm0, %v86_v10 }
  0x1c   :  { %179 = vmatpush.msrb.mxu1 %v141_v12  ;;  %208 = vmatpush.msra.mxu2 %v136_v19 }
  0x1e   :  { %180 = vmatpush.msrb.mxu1 %v139_v14 }
  0x20   :  { %181 = vmatpush.msrb.mxu1 %v137_v16  ;;  %v2621_v16 = vld [vmem:[%s3291_s23] sm:$0xff] }
  0x22   :  { %182 = vmatpush.msrb.mxu1 %v135_v18 }
  0x90   :  { %v120_v21 = vpop.f32.mrf.mxu0  ;;  %v126_v28 = vpop.f32.mrf.mxu1 }
  0x91   :  { %v121_v23 = vadd.f32 %v2156_v20, %v120_v21  ;;  %v127_v30 = vadd.f32 %v2156_v20, %v126_v28  ;;  %v2640_v28 = vld [vmem:[%s3291_s23 + $0x10] sm:$0xf] }
  0x93   :  { %v2512_v24 = vadd.f32 %v129_v22, %v121_v23  ;;  %v2530_v32 = vadd.f32 %v131_v31, %v127_v30 }
  0x95   :  { %1982 = vmatmul.msk.f32.vlgmr.msrb.gmra.mxu1 %vm157_vm1, %v2512_v24  ;;  %1985 = vmatmul.msk.f32.vlgmr.msra.gmra.mxu2 %vm157_vm1, %v2512_v24 }
  0x98   :  { %v123_v25 = vpop.f32.mrf.mxu0 }
  0x99   :  { %v124_v27 = vadd.f32 %v2156_v20, %v123_v25  ;;  %v2628_v20 = vld [vmem:[%s3291_s23 + $0x8] sm:$0xff] }
  0x9b   :  { %v2521_v29 = vadd.f32 %v130_v26, %v124_v27 }
  0x9d   :  { %1983 = vmatmul.msk.f32.gmra.mxu1 %vm157_vm1, %v2521_v29  ;;  %1986 = vmatmul.msk.f32.gmra.mxu2 %vm157_vm1, %v2521_v29 }
  0xa5   :  { %1984 = vmatmul.msk.f32.gmra.mxu1 %vm157_vm1, %v2530_v32  ;;  %1987 = vmatmul.msk.f32.gmra.mxu2 %vm157_vm1, %v2530_v32 }
 0x112   :  { %v184_v35 = vpop.f32.mrf.mxu1 }
 0x113   :  { %v185_v36 = vadd.f32 %v184_v35, %v153_v34 }
 0x115   :  { %229 = vrot.lane.b32.xlu1 %v185_v36, %s2333_s29  ;;  %v2565_v59 = vmul.f32 0.25, %v185_v36 }
 0x117   :  { %v223_v1 = vmul.f32 %v2547_v47, %v2565_v59  ;;  %v315_v2 = vmul.f32 %v2568_v60, %v2565_v59  ;;  %v467_v4 = vmul.f32 %v2570_v61, %v2565_v59 }
 0x118   :  { %v210_v37 = vpop.f32.mrf.mxu2 }
 0x119   :  { %v211_v48 = vadd.f32 %v210_v37, %v154_v43 }
 0x11a   :  { %v187_v38 = vpop.f32.mrf.mxu1 }
 0x11b   :  { %v188_v49 = vadd.f32 %v187_v38, %v153_v34  ;;  %v311_v53 = vmul.f32 %v2547_v47, %v211_v48  ;;  %v654_v56 = vmul.f32 %v2553_v52, %v211_v48  ;;  %v386_v6 = vmul.f32 %v2568_v60, %v211_v48 }
 0x11c   :  { %v538_v8 = vmul.f32 %v2570_v61, %v211_v48 }
 0x11d   :  { %v2591_v7 = vmul.f32 0.25, %v188_v49 }
 0x11f   :  { %v316_v9 = vmul.f32 %v2568_v60, %v2591_v7  ;;  %v224_v10 = vmul.f32 %v2547_v47, %v2591_v7  ;;  %v468_v11 = vmul.f32 %v2570_v61, %v2591_v7 }
 0x120   :  { %v213_v39 = vpop.f32.mrf.mxu2 }
 0x121   :  { %v214_v45 = vadd.f32 %v213_v39, %v154_v43 }
 0x122   :  { %v190_v40 = vpop.f32.mrf.mxu1 }
 0x123   :  { %v2540_v41 = vadd.f32 %v190_v40, %v153_v34  ;;  %v312_v51 = vmul.f32 %v2547_v47, %v214_v45  ;;  %v655_v55 = vmul.f32 %v2553_v52, %v214_v45  ;;  %v387_v3 = vmul.f32 %v2568_v60, %v214_v45 }
 0x124   :  { %v539_v5 = vmul.f32 %v2570_v61, %v214_v45 }
 0x125   :  { %233 = vrot.lane.b32.xlu0 %v2540_v41, %s2333_s29  ;;  %v2606_v12 = vmul.f32 0.25, %v2540_v41 }
 0x127   :  { %v317_v13 = vmul.f32 %v2568_v60, %v2606_v12  ;;  %v225_v14 = vmul.f32 %v2547_v47, %v2606_v12  ;;  %v469_v15 = vmul.f32 %v2570_v61, %v2606_v12 }
 0x128   :  { %v216_v44 = vpop.f32.mrf.mxu2 }
 0x129   :  { %v217_v46 = vadd.f32 %v216_v44, %v154_v43 }
 0x12b   :  { %v313_v50 = vmul.f32 %v2547_v47, %v217_v46  ;;  %v656_v54 = vmul.f32 %v2553_v52, %v217_v46  ;;  %v388_v63 = vmul.f32 %v2568_v60, %v217_v46  ;;  %v540_v0 = vmul.f32 %v2570_v61, %v217_v46 }
 0x12d   :  { %231 = vrot.lane.b32.xlu0 %v188_v49, %s2333_s29  ;;  %2004 = vmatpush.msk.msra.mxu1 %vm398_vm2, %v313_v50 }
 0x12f   :  { %454 = vmatpush.msra.mxu1 %v312_v51 }
 0x131   :  { %455 = vmatpush.msra.mxu1 %v311_v53 }
 0x133   :  { %2024 = vmatpush.msk.msrb.mxu1 %vm398_vm2, %v656_v54 }
 0x135   :  { %683 = vmatpush.msrb.mxu1 %v655_v55 }
 0x137   :  { %684 = vmatpush.msrb.mxu1 %v654_v56 }
 0x187   :  { %v230_v62 = vpop.permute.xlu1 %229 }
 0x197   :  { %v234_v57 = vpop.permute.xlu0 %233 }
 0x198   :  { %1988 = vmatpush.xpose.msk.msra.mxu3 %vm157_vm1, %v234_v57  ;;  %1994 = vmatpush.xpose.msk.msrb.mxu0 %vm157_vm1, %v234_v57 }
 0x199   :  { %2008 = vmatpush.xpose.msk.msrb.mxu2 %vm157_vm1, %v234_v57 }
 0x19f   :  { %v232_v58 = vpop.permute.xlu0 %231 }
 0x1a0   :  { %1989 = vmatpush.xpose.msk.msra.mxu3 %vm157_vm1, %v232_v58  ;;  %1995 = vmatpush.xpose.msk.msrb.mxu0 %vm157_vm1, %v232_v58 }
 0x1a1   :  { %2009 = vmatpush.xpose.msk.msrb.mxu2 %vm157_vm1, %v232_v58 }
 0x1a4   :  { %1990 = vmatpush.xpose.msk.msra.mxu3 %vm157_vm1, %v230_v62  ;;  %1996 = vmatpush.xpose.msk.msrb.mxu0 %vm157_vm1, %v230_v62 }
 0x1a5   :  { %2010 = vmatpush.xpose.msk.msrb.mxu2 %vm157_vm1, %v230_v62 }
 0x1a7   :  { %1991 = vmatmul.msk.f32.vlgmr.msra.gmra.mxu3 %vm157_vm1, %v223_v1  ;;  %1997 = vmatmul.msk.f32.vlgmr.msrb.gmra.mxu0 %vm157_vm1, %v315_v2 }
 0x1a8   :  { %2000 = vmatpush.msk.msrb.mxu3 %vm398_vm2, %v388_v63  ;;  %2014 = vmatpush.msk.msra.mxu0 %vm398_vm2, %v540_v0 }
 0x1a9   :  { %2011 = vmatmul.msk.f32.vlgmr.msrb.gmra.mxu2 %vm157_vm1, %v467_v4 }
 0x1aa   :  { %416 = vmatpush.msrb.mxu3 %v387_v3  ;;  %567 = vmatpush.msra.mxu0 %v539_v5 }
 0x1ac   :  { %417 = vmatpush.msrb.mxu3 %v386_v6  ;;  %568 = vmatpush.msra.mxu0 %v538_v8 }
 0x1ae   :  { %2018 = vmatpush.xpose.msk.msra.mxu3 %vm157_vm1, %v234_v57 }
 0x1af   :  { %1998 = vmatmul.msk.f32.gmra.mxu0 %vm157_vm1, %v316_v9  ;;  %1992 = vmatmul.msk.f32.gmra.mxu3 %vm157_vm1, %v224_v10 }
 0x1b1   :  { %2012 = vmatmul.msk.f32.gmra.mxu2 %vm157_vm1, %v468_v11 }
 0x1b2   :  { %2019 = vmatpush.xpose.msk.msra.mxu3 %vm157_vm1, %v232_v58 }
 0x1b6   :  { %2020 = vmatpush.xpose.msk.msra.mxu3 %vm157_vm1, %v230_v62 }
 0x1b7   :  { %1999 = vmatmul.msk.f32.gmra.mxu0 %vm157_vm1, %v317_v13  ;;  %1993 = vmatmul.msk.f32.gmra.mxu3 %vm157_vm1, %v225_v14  ;;  %v583_v13 = vmul.f32 %v2553_v52, %v2565_v59  ;;  %v584_v14 = vmul.f32 %v2553_v52, %v2591_v7 }
 0x1b9   :  { %2013 = vmatmul.msk.f32.gmra.mxu2 %vm157_vm1, %v469_v15  ;;  %v585_v15 = vmul.f32 %v2553_v52, %v2606_v12 }
 0x224   :  { %v344_v17 = vpop.f32.mrf.mxu0 }
 0x225   :  { %v345_v18 = vadd.f32 %v344_v17, %v2621_v16 }
 0x227   :  { %v353_v19 = vsel %vm276_vm3, %v345_v18, -inf }
 0x228   :  { %354 = vmax.xlane.f32.xlu1 %v353_v19 }
 0x22a   :  { %v267_v51 = vpop.f32.mrf.mxu3 }
 0x22b   :  { %v268_v55 = vadd.f32 %v267_v51, %v2621_v16 }
 0x22c   :  { %v496_v21 = vpop.f32.mrf.mxu2  ;;  %v347_v23 = vpop.f32.mrf.mxu0 }
 0x22d   :  { %v2631_v22 = vadd.f32 %v496_v21, %v2621_v16  ;;  %v348_v25 = vadd.f32 %v347_v23, %v2628_v20  ;;  %v277_v57 = vsel %vm276_vm3, %v268_v55, -inf }
 0x22f   :  { %v356_v26 = vsel %vm276_vm3, %v348_v25, -inf  ;;  %v505_v27 = vsel %vm276_vm3, %v2631_v22, -inf }
 0x230   :  { %357 = vmax.xlane.f32.xlu2 %v356_v26  ;;  %506 = vmax.xlane.f32.xlu1 %v505_v27 }
 0x232   :  { %v270_v56 = vpop.f32.mrf.mxu3 }
 0x233   :  { %v271_v58 = vadd.f32 %v270_v56, %v2628_v20 }
 0x234   :  { %v350_v30 = vpop.f32.mrf.mxu0  ;;  %v499_v42 = vpop.f32.mrf.mxu2 }
 0x235   :  { %v351_v31 = vadd.f32 %v350_v30, %v2640_v28  ;;  %v2646_v43 = vadd.f32 %v499_v42, %v2628_v20  ;;  %v280_v62 = vsel %vm276_vm3, %v271_v58, -inf }
 0x237   :  { %v359_v33 = vsel %vm283_vm4, %v351_v31, -inf  ;;  %v508_v50 = vsel %vm276_vm3, %v2646_v43, -inf }
 0x238   :  { %360 = vmax.xlane.f32.xlu2 %v359_v33 }
 0x23a   :  { %v273_v63 = vpop.f32.mrf.mxu3 }
 0x23b   :  { %v274_v0 = vadd.f32 %v273_v63, %v2640_v28 }
 0x23c   :  { %v502_v30 = vpop.f32.mrf.mxu2 }
 0x23d   :  { %v284_v1 = vsel %vm283_vm4, %v274_v0, -inf  ;;  %v503_v33 = vadd.f32 %v502_v30, %v2640_v28 }
 0x29b   :  { %v355_v34 = vpop.xlane.xlu1 %354 }
 0x29c   :  { %v362_v35 = vsub.f32 %v345_v18, %v355_v34 }
 0x29e   :  { %v365_v36 = vmul.f32 1.442695, %v362_v35 }
 0x2a0   :  { %2173 = vpow2.f32 %v365_v36 }
 0x2a3   :  { %v358_v37 = vpop.xlane.xlu2 %357  ;;  %v507_v12 = vpop.xlane.xlu1 %506 }
 0x2a4   :  { %v363_v38 = vsub.f32 %v348_v25, %v358_v37  ;;  %v514_v37 = vsub.f32 %v2631_v22, %v507_v12 }
 0x2a6   :  { %v2174_v39 = vpop.eup %2173  ;;  %v367_v40 = vmul.f32 1.442695, %v363_v38 }
 0x2a7   :  { %v371_v41 = vsel %vm276_vm3, %v2174_v39, 0.0 }
 0x2a8   :  { %2175 = vpow2.f32 %v367_v40  ;;  %372 = vadd.xlane.f32.xlu0 %v371_v41  ;;  %v511_v40 = vsel %vm283_vm4, %v503_v33, -inf  ;;  %v517_v41 = vmul.f32 1.442695, %v514_v37 }
 0x2ab   :  { %v361_v44 = vpop.xlane.xlu2 %360 }
 0x2ac   :  { %v364_v45 = vsub.f32 %v351_v31, %v361_v44 }
 0x2ae   :  { %v2176_v46 = vpop.eup %2175  ;;  %v369_v48 = vmul.f32 1.442695, %v364_v45 }
 0x2af   :  { %v374_v49 = vsel %vm276_vm3, %v2176_v46, 0.0 }
 0x2b0   :  { %2177 = vpow2.f32 %v369_v48  ;;  %375 = vadd.xlane.f32.xlu2 %v374_v49  ;;  %509 = vmax.xlane.f32.xlu0 %v508_v50 }
 0x2b6   :  { %v2178_v53 = vpop.eup %2177 }
 0x2b7   :  { %v377_v54 = vsel %vm283_vm4, %v2178_v53, 0.0 }
 0x2b8   :  { %378 = vadd.xlane.f32.xlu2 %v377_v54 }
 0x2c0   :  { %278 = vmax.xlane.f32.xlu2 %v277_v57 }
 0x2c8   :  { %281 = vmax.xlane.f32.xlu2 %v280_v62 }
 0x2d0   :  { %285 = vmax.xlane.f32.xlu2 %v284_v1 }
 0x31b   :  { %v373_v2 = vpop.xlane.xlu0 %372 }
 0x31c   :  { %2179 = vrcp.f32 %v373_v2 }
 0x322   :  { %v2180_v3 = vpop.eup %2179 }
 0x323   :  { %v376_v4 = vpop.xlane.xlu2 %375  ;;  %v383_v5 = vmul.f32 %v2180_v3, %v2174_v39  ;;  %v510_v44 = vpop.xlane.xlu0 %509 }
 0x324   :  { %2181 = vrcp.f32 %v376_v4 }
 0x325   :  { %2001 = vmatmul.msk.f32.vlgmr.msrb.gmra.mxu3 %vm276_vm3, %v383_v5 }
 0x32a   :  { %v2182_v6 = vpop.eup %2181 }
 0x32b   :  { %v379_v8 = vpop.xlane.xlu2 %378  ;;  %v384_v9 = vmul.f32 %v2182_v6, %v2176_v46 }
 0x32c   :  { %2183 = vrcp.f32 %v379_v8 }
 0x32d   :  { %2002 = vmatmul.msk.f32.gmra.mxu3 %vm276_vm3, %v384_v9 }
 0x332   :  { %v2184_v10 = vpop.eup %2183 }
 0x333   :  { %v385_v11 = vmul.f32 %v2184_v10, %v2178_v53  ;;  %v279_v19 = vpop.xlane.xlu2 %278 }
 0x334   :  { %v287_v26 = vsub.f32 %v268_v55, %v279_v19 }
 0x335   :  { %2003 = vmatmul.msk.f32.gmra.mxu3 %vm276_vm3, %v385_v11 }
 0x336   :  { %v290_v31 = vmul.f32 1.442695, %v287_v26 }
 0x338   :  { %2185 = vpow2.f32 %v290_v31 }
 0x33b   :  { %v282_v59 = vpop.xlane.xlu2 %281 }
 0x33c   :  { %v288_v7 = vsub.f32 %v271_v58, %v282_v59 }
 0x33d   :  { %2021 = vmatmul.msk.f32.vlgmr.msra.gmra.mxu3 %vm157_vm1, %v583_v13 }
 0x33e   :  { %v292_v34 = vmul.f32 1.442695, %v288_v7  ;;  %v2186_v45 = vpop.eup %2185 }
 0x33f   :  { %v296_v50 = vsel %vm276_vm3, %v2186_v45, 0.0 }
 0x340   :  { %2187 = vpow2.f32 %v292_v34 }
 0x341   :  { %2189 = vpow2.f32 %v517_v41 }
 0x343   :  { %v286_v35 = vpop.xlane.xlu2 %285 }
 0x344   :  { %v289_v39 = vsub.f32 %v274_v0, %v286_v35 }
 0x345   :  { %2022 = vmatmul.msk.f32.gmra.mxu3 %vm157_vm1, %v584_v14 }
 0x346   :  { %v294_v42 = vmul.f32 1.442695, %v289_v39  ;;  %v2683_v48 = vpop.eup %2187 }
 0x347   :  { %v299_v51 = vsel %vm276_vm3, %v2683_v48, 0.0  ;;  %v2190_v54 = vpop.eup %2189 }
 0x348   :  { %2191 = vpow2.f32 %v294_v42  ;;  %v523_v56 = vsel %vm276_vm3, %v2190_v54, 0.0 }
 0x34d   :  { %2023 = vmatmul.msk.f32.gmra.mxu3 %vm157_vm1, %v585_v15 }
 0x34e   :  { %v2192_v55 = vpop.eup %2191 }
 0x3a8   :  { %v2670_v17 = vpop.f32.mrf.mxu3 }
 0x3b0   :  { %v2672_v18 = vpop.f32.mrf.mxu3 }
 0x3b8   :  { %v2674_v21 = vpop.f32.mrf.mxu3 }
 0x3c0   :  { %v612_v23 = vpop.f32.mrf.mxu3 }
 0x3c1   :  { %v613_v25 = vadd.f32 %v612_v23, %v2621_v16 }
 0x3c3   :  { %v621_v27 = vsel %vm276_vm3, %v613_v25, -inf }
 0x3c4   :  { %622 = vmax.xlane.f32.xlu2 %v621_v27 }
 0x3c8   :  { %v615_v36 = vpop.f32.mrf.mxu3 }
 0x3c9   :  { %v616_v38 = vadd.f32 %v615_v36, %v2628_v20  ;;  %v515_v20 = vsub.f32 %v2646_v43, %v510_v44 }
 0x3cb   :  { %v624_v16 = vsel %vm276_vm3, %v616_v38, -inf  ;;  %v519_v53 = vmul.f32 1.442695, %v515_v20  ;;  %v702_v20 = vld [vmem:[%s3266_s8 + $0x20] sm:$0xff] }
 0x3cc   :  { %625 = vmax.xlane.f32.xlu1 %v624_v16  ;;  %512 = vmax.xlane.f32.xlu2 %v511_v40 }
 0x3cd   :  { %2193 = vpow2.f32 %v519_v53 }
 0x3d0   :  { %v618_v46 = vpop.f32.mrf.mxu3 }
 0x3d1   :  { %v619_v22 = vadd.f32 %v618_v46, %v2640_v28  ;;  %v302_v28 = vsel %vm283_vm4, %v2192_v55, 0.0  ;;  %v704_v46 = vld [vmem:[%s3266_s8 + $0x30] sm:$0xff] }
 0x3d3   :  { %v627_v49 = vsel %vm283_vm4, %v619_v22, -inf  ;;  %v2194_v43 = vpop.eup %2193 }
 0x3d4   :  { %628 = vmax.xlane.f32.xlu0 %v627_v49  ;;  %297 = vadd.xlane.f32.xlu1 %v296_v50  ;;  %v526_v57 = vsel %vm276_vm3, %v2194_v43, 0.0  ;;  %v701_v49 = vld [vmem:[%s3266_s8 + $0x18] sm:$0xff] }
 0x3d5   :  { %300 = vadd.xlane.f32.xlu2 %v299_v51 }
 0x3dc   :  { %524 = vadd.xlane.f32.xlu1 %v523_v56  ;;  %303 = vadd.xlane.f32.xlu0 %v302_v28 }
 0x3e4   :  { %527 = vadd.xlane.f32.xlu0 %v526_v57  ;;  %v699_v57 = vld [vmem:[%s3266_s8 + $0x8] sm:$0xff] }
 0x437   :  { %v623_v58 = vpop.xlane.xlu2 %622 }
 0x438   :  { %v630_v62 = vsub.f32 %v613_v25, %v623_v58  ;;  %v698_v58 = vld [vmem:[%s3266_s8] sm:$0xff] }
 0x43a   :  { %v633_v63 = vmul.f32 1.442695, %v630_v62 }
 0x43c   :  { %2195 = vpow2.f32 %v633_v63 }
 0x43f   :  { %v626_v0 = vpop.xlane.xlu1 %625  ;;  %v513_v1 = vpop.xlane.xlu2 %512 }
 0x440   :  { %v631_v2 = vsub.f32 %v616_v38, %v626_v0  ;;  %v516_v3 = vsub.f32 %v503_v33, %v513_v1 }
 0x442   :  { %v2196_v4 = vpop.eup %2195  ;;  %v635_v5 = vmul.f32 1.442695, %v631_v2  ;;  %v521_v6 = vmul.f32 1.442695, %v516_v3 }
 0x443   :  { %v639_v8 = vsel %vm276_vm3, %v2196_v4, 0.0 }
 0x444   :  { %2197 = vpow2.f32 %v635_v5  ;;  %640 = vadd.xlane.f32.xlu2 %v639_v8 }
 0x445   :  { %2199 = vpow2.f32 %v521_v6 }
 0x447   :  { %v629_v9 = vpop.xlane.xlu0 %628  ;;  %v298_v10 = vpop.xlane.xlu1 %297 }
 0x448   :  { %v632_v11 = vsub.f32 %v619_v22, %v629_v9  ;;  %2201 = vrcp.f32 %v298_v10  ;;  %v301_v19 = vpop.xlane.xlu2 %300  ;;  %v703_v22 = vld [vmem:[%s3266_s8 + $0x28] sm:$0xff] }
 0x44a   :  { %v2198_v13 = vpop.eup %2197  ;;  %v637_v14 = vmul.f32 1.442695, %v632_v11 }
 0x44b   :  { %v2200_v15 = vpop.eup %2199  ;;  %v642_v59 = vsel %vm276_vm3, %v2198_v13, 0.0 }
 0x44c   :  { %2203 = vpow2.f32 %v637_v14  ;;  %643 = vadd.xlane.f32.xlu1 %v642_v59  ;;  %v529_v23 = vsel %vm283_vm4, %v2200_v15, 0.0 }
 0x44d   :  { %530 = vadd.xlane.f32.xlu2 %v529_v23  ;;  %2205 = vrcp.f32 %v301_v19 }
 0x44e   :  { %v2202_v25 = vpop.eup %2201 }
 0x44f   :  { %v308_v26 = vmul.f32 %v2202_v25, %v2186_v45  ;;  %v525_v7 = vpop.xlane.xlu1 %524  ;;  %v304_v27 = vpop.xlane.xlu0 %303  ;;  %v705_v45 = vld [vmem:[%s3266_s8 + $0x38] sm:$0xff] }
 0x450   :  { %2207 = vrcp.f32 %v525_v7  ;;  %727 = vmatpush.msra.mxu2 %v705_v45 }
 0x451   :  { %2005 = vmatmul.msk.f32.vlgmr.msra.gmra.mxu1 %vm276_vm3, %v308_v26  ;;  %2209 = vrcp.f32 %v304_v27 }
 0x452   :  { %v2204_v30 = vpop.eup %2203  ;;  %728 = vmatpush.msra.mxu2 %v704_v46 }
 0x453   :  { %v645_v12 = vsel %vm283_vm4, %v2204_v30, 0.0  ;;  %v2206_v31 = vpop.eup %2205 }
 0x454   :  { %646 = vadd.xlane.f32.xlu0 %v645_v12  ;;  %v309_v36 = vmul.f32 %v2206_v31, %v2683_v48  ;;  %729 = vmatpush.msra.mxu2 %v703_v22 }
 0x456   :  { %v2208_v33 = vpop.eup %2207  ;;  %730 = vmatpush.msra.mxu2 %v702_v20 }
 0x457   :  { %v535_v34 = vmul.f32 %v2208_v33, %v2190_v54  ;;  %v528_v35 = vpop.xlane.xlu0 %527  ;;  %v2210_v37 = vpop.eup %2209 }
 0x458   :  { %2211 = vrcp.f32 %v528_v35  ;;  %v310_v39 = vmul.f32 %v2210_v37, %v2192_v55  ;;  %v700_v55 = vld [vmem:[%s3266_s8 + $0x10] sm:$0xff]  ;;  %731 = vmatpush.msra.mxu2 %v701_v49  ;;  %v2334_v35 = vmov 64.0  }
 0x459   :  { %2006 = vmatmul.msk.f32.gmra.mxu1 %vm276_vm3, %v309_v36  ;;  %2015 = vmatmul.msk.f32.vlgmr.msra.gmra.mxu0 %vm276_vm3, %v535_v34 }
 0x45a   :  { %732 = vmatpush.msra.mxu2 %v700_v55  ;;  %v842_v55 = vld [vmem:[#allocation2 + $0x30] sm:$0xff] }
 0x45c   :  { %733 = vmatpush.msra.mxu2 %v699_v57  ;;  %v838_v57 = vld [vmem:[#allocation2 + $0x10] sm:$0xff] }
 0x45e   :  { %v2212_v38 = vpop.eup %2211  ;;  %734 = vmatpush.msra.mxu2 %v698_v58  ;;  %v837_v58 = vld [vmem:[#allocation2 + $0x8] sm:$0xff] }
 0x45f   :  { %v536_v16 = vmul.f32 %v2212_v38, %v2194_v43 }
 0x461   :  { %2007 = vmatmul.msk.f32.gmra.mxu1 %vm276_vm3, %v310_v39  ;;  %2016 = vmatmul.msk.f32.gmra.mxu0 %vm276_vm3, %v536_v16 }
 0x4b7   :  { %v641_v40 = vpop.xlane.xlu2 %640 }
 0x4b8   :  { %2213 = vrcp.f32 %v641_v40 }
 0x4be   :  { %v2214_v41 = vpop.eup %2213 }
 0x4bf   :  { %v651_v42 = vmul.f32 %v2214_v41, %v2196_v4  ;;  %v644_v44 = vpop.xlane.xlu1 %643 }
 0x4c0   :  { %2215 = vrcp.f32 %v644_v44  ;;  %v531_v48 = vpop.xlane.xlu2 %530 }
 0x4c1   :  { %2217 = vrcp.f32 %v531_v48  ;;  %2025 = vmatmul.msk.f32.vlgmr.msrb.gmra.mxu1 %vm276_vm3, %v651_v42 }
 0x4c6   :  { %v2216_v50 = vpop.eup %2215 }
 0x4c7   :  { %v2218_v51 = vpop.eup %2217  ;;  %v647_v53 = vpop.xlane.xlu0 %646  ;;  %v652_v54 = vmul.f32 %v2216_v50, %v2198_v13 }
 0x4c8   :  { %2219 = vrcp.f32 %v647_v53  ;;  %v537_v56 = vmul.f32 %v2218_v51, %v2200_v15 }
 0x4c9   :  { %2026 = vmatmul.msk.f32.gmra.mxu1 %vm276_vm3, %v652_v54  ;;  %2221 = vrcp.f32 %v2334_v35  ;;  %v843_v54 = vld [vmem:[#allocation2 + $0x38] sm:$0xff] }
 0x4ca   :  { %2017 = vmatmul.msk.f32.gmra.mxu0 %vm276_vm3, %v537_v56  ;;  %v841_v56 = vld [vmem:[#allocation2 + $0x28] sm:$0xff] }
 0x4cb   :  { %865 = vmatpush.msrb.mxu0 %v843_v54 }
 0x4cd   :  { %866 = vmatpush.msrb.mxu0 %v842_v55 }
 0x4ce   :  { %v2220_v28 = vpop.eup %2219  ;;  %v457_v62 = vpop.f32.mrf.mxu1 }
 0x4cf   :  { %v653_v43 = vmul.f32 %v2220_v28, %v2204_v30  ;;  %v458_v2 = vadd.f32 %v457_v62, %v2670_v17  ;;  %v2157_v17 = vld [vmem:[%s3267_s9] ss:$0 sm:$0xff]  ;;  %867 = vmatpush.msrb.mxu0 %v841_v56 }
 0x4d0   :  { %v840_v28 = vld [vmem:[#allocation2 + $0x20] sm:$0xff] }
 0x4d1   :  { %2027 = vmatmul.msk.f32.gmra.mxu1 %vm276_vm3, %v653_v43  ;;  %868 = vmatpush.msrb.mxu0 %v840_v28  ;;  %v839_v43 = vld [vmem:[#allocation2 + $0x18] sm:$0xff]  ;;  %v836_v62 = vld [vmem:[#allocation2] sm:$0xff] }
 0x4d3   :  { %869 = vmatpush.msrb.mxu0 %v839_v43  ;;  %v888_v43 = vld [vmem:[%s3270_s12 + $0x10] sm:$0xff] }
 0x4d5   :  { %870 = vmatpush.msrb.mxu0 %v838_v57  ;;  %v887_v57 = vld [vmem:[%s3270_s12 + $0x8] sm:$0xff] }
 0x4d6   :  { %v460_v63 = vpop.f32.mrf.mxu1  ;;  %v570_v1 = vpop.f32.mrf.mxu0 }
 0x4d7   :  { %v579_v3 = vadd.f32 %v570_v1, %v458_v2  ;;  %v461_v8 = vadd.f32 %v460_v63, %v2672_v18  ;;  %871 = vmatpush.msrb.mxu0 %v837_v58  ;;  %v886_v58 = vld [vmem:[%s3270_s12] sm:$0xff] }
 0x4d9   :  { %872 = vmatpush.msrb.mxu0 %v836_v62 }
 0x4de   :  { %v463_v0 = vpop.f32.mrf.mxu1  ;;  %v573_v6 = vpop.f32.mrf.mxu0 }
 0x4df   :  { %v580_v9 = vadd.f32 %v573_v6, %v461_v8  ;;  %v464_v14 = vadd.f32 %v463_v0, %v2674_v21  ;;  %v901_v8 = vld [vmem:[%s3270_s12 + $0x78] sm:$0xff] }
 0x4e0   :  { %906 = vmatpush.msrb.mxu3 %v901_v8  ;;  %v2161_v8 = vld [vmem:[%s3271_s13] ss:$0 sm:$0xff] }
 0x53e   :  { %v686_v4 = vpop.f32.mrf.mxu1 }
 0x53f   :  { %v695_v5 = vadd.f32 %v686_v4, %v579_v3 }
 0x541   :  { %2028 = vmatmul.msk.f32.vlgmr.msra.gmra.mxu2 %vm157_vm1, %v695_v5 }
 0x546   :  { %v689_v10 = vpop.f32.mrf.mxu1 }
 0x547   :  { %v696_v11 = vadd.f32 %v689_v10, %v580_v9  ;;  %v576_v13 = vpop.f32.mrf.mxu0  ;;  %v900_v9 = vld [vmem:[%s3270_s12 + $0x70] sm:$0xff] }
 0x548   :  { %v581_v15 = vadd.f32 %v576_v13, %v464_v14  ;;  %907 = vmatpush.msrb.mxu3 %v900_v9 }
 0x549   :  { %2029 = vmatmul.msk.f32.gmra.mxu2 %vm157_vm1, %v696_v11  ;;  %v899_v11 = vld [vmem:[%s3270_s12 + $0x68] sm:$0xff] }
 0x54a   :  { %908 = vmatpush.msrb.mxu3 %v899_v11 }
 0x54e   :  { %v692_v19 = vpop.f32.mrf.mxu1 }
 0x54f   :  { %v697_v59 = vadd.f32 %v692_v19, %v581_v15  ;;  %v898_v19 = vld [vmem:[%s3270_s12 + $0x60] sm:$0xff] }
 0x550   :  { %909 = vmatpush.msrb.mxu3 %v898_v19 }
 0x551   :  { %2030 = vmatmul.msk.f32.gmra.mxu2 %vm157_vm1, %v697_v59 }
 0x5c4   :  { %v736_v23 = vpop.f32.mrf.mxu2 }
 0x5c5   :  { %v737_v25 = vadd.f32 %v2157_v17, %v736_v23 }
 0x5c7   :  { %v745_v18 = vadd.f32 %v737_v25, %v2512_v24  ;;  %v2222_v24 = vpop.eup %2221  ;;  %v897_v25 = vld [vmem:[%s3270_s12 + $0x58] sm:$0xff] }
 0x5c8   :  { %v761_v36 = vmul.f32 64.0, %v2222_v24  ;;  %vm765_vm6 = vweird.f32 %v2222_v24  ;;  %910 = vmatpush.msrb.mxu3 %v897_v25 }
 0x5c9   :  { %v750_v26 = vsel %vm157_vm1, %v745_v18, 0.0 }
 0x5ca   :  { %751 = vadd.xlane.f32.xlu1 %v750_v26  ;;  %v762_v37 = vsub.f32 1.0, %v761_v36 }
 0x5cc   :  { %v739_v7 = vpop.f32.mrf.mxu2  ;;  %v763_v38 = vmul.f32 %v2222_v24, %v762_v37 }
 0x5cd   :  { %v740_v27 = vadd.f32 %v2157_v17, %v739_v7  ;;  %v2158_v7 = vld [vmem:[%s3272_s14] ss:$0 sm:$0xff] }
 0x5ce   :  { %v764_v39 = vadd.f32 %v2222_v24, %v763_v38 }
 0x5cf   :  { %v746_v21 = vadd.f32 %v740_v27, %v2521_v29  ;;  %v896_v27 = vld [vmem:[%s3270_s12 + $0x50] sm:$0xff] }
 0x5d0   :  { %v2747_v29 = vsel %vm765_vm6, %v2222_v24, %v764_v39  ;;  %911 = vmatpush.msrb.mxu3 %v896_v27  ;;  %v894_v24 = vld [vmem:[%s3270_s12 + $0x40] sm:$0xff]  ;;  %v893_v39 = vld [vmem:[%s3270_s12 + $0x38] sm:$0xff] }
 0x5d1   :  { %v753_v30 = vsel %vm157_vm1, %v746_v21, 0.0 }
 0x5d2   :  { %754 = vadd.xlane.f32.xlu2 %v753_v30 }
 0x5d4   :  { %v742_v12 = vpop.f32.mrf.mxu2 }
 0x5d5   :  { %v743_v31 = vadd.f32 %v2157_v17, %v742_v12 }
 0x5d7   :  { %v747_v33 = vadd.f32 %v743_v31, %v2530_v32  ;;  %v2159_v31 = vld [vmem:[%s3273_s15] ss:$0 sm:$0xff] }
 0x5d9   :  { %v757_v34 = vsel %vm756_vm5, %v747_v33, 0.0 }
 0x5da   :  { %758 = vadd.xlane.f32.xlu0 %v757_v34 }
 0x63d   :  { %v752_v16 = vpop.xlane.xlu1 %751 }
 0x63e   :  { %v767_v40 = vmul.f32 %v2747_v29, %v752_v16 }
 0x640   :  { %v2750_v41 = vsub.f32 %v745_v18, %v767_v40 }
 0x642   :  { %v773_v32 = vmul.f32 %v2750_v41, %v2750_v41 }
 0x644   :  { %v776_v42 = vsel %vm157_vm1, %v773_v32, 0.0 }
 0x645   :  { %777 = vadd.xlane.f32.xlu1 %v776_v42  ;;  %v755_v44 = vpop.xlane.xlu2 %754 }
 0x646   :  { %v768_v45 = vmul.f32 %v2747_v29, %v755_v44 }
 0x648   :  { %v2756_v46 = vsub.f32 %v746_v21, %v768_v45  ;;  %v891_v45 = vld [vmem:[%s3270_s12 + $0x28] sm:$0xff] }
 0x64a   :  { %v774_v48 = vmul.f32 %v2756_v46, %v2756_v46 }
 0x64c   :  { %v779_v22 = vsel %vm157_vm1, %v774_v48, 0.0 }
 0x64d   :  { %v759_v20 = vpop.xlane.xlu0 %758  ;;  %780 = vadd.xlane.f32.xlu2 %v779_v22 }
 0x64e   :  { %v769_v49 = vmul.f32 %v2747_v29, %v759_v20  ;;  %v890_v20 = vld [vmem:[%s3270_s12 + $0x20] sm:$0xff] }
 0x650   :  { %v2762_v50 = vsub.f32 %v747_v33, %v769_v49  ;;  %v895_v33 = vld [vmem:[%s3270_s12 + $0x48] sm:$0xff] }
 0x651   :  { %912 = vmatpush.msrb.mxu3 %v895_v33 }
 0x652   :  { %v775_v51 = vmul.f32 %v2762_v50, %v2762_v50 }
 0x653   :  { %913 = vmatpush.msrb.mxu3 %v894_v24 }
 0x654   :  { %v782_v53 = vsel %vm756_vm5, %v775_v51, 0.0 }
 0x655   :  { %783 = vadd.xlane.f32.xlu0 %v782_v53  ;;  %914 = vmatpush.msrb.mxu3 %v893_v39  ;;  %v889_v53 = vld [vmem:[%s3270_s12 + $0x18] sm:$0xff] }
 0x6b8   :  { %v778_v63 = vpop.xlane.xlu1 %777 }
 0x6b9   :  { %v785_v0 = vmul.f32 %v778_v63, %v2747_v29 }
 0x6bb   :  { %v788_v1 = vadd.f32 1e-05, %v785_v0 }
 0x6bd   :  { %2223 = vrsqrt.f32 %v788_v1  ;;  %vm797_vm8 = vweird.f32 %v788_v1 }
 0x6c0   :  { %v781_v2 = vpop.xlane.xlu2 %780 }
 0x6c1   :  { %v786_v3 = vmul.f32 %v781_v2, %v2747_v29 }
 0x6c3   :  { %v2224_v4 = vpop.eup %2223  ;;  %v789_v5 = vadd.f32 1e-05, %v786_v3 }
 0x6c4   :  { %v792_v6 = vmul.f32 %v2224_v4, %v788_v1  ;;  %vm798_vm7 = vweird.f32 %v2224_v4 }
 0x6c5   :  { %2225 = vrsqrt.f32 %v789_v5  ;;  %vm799_vm9 = vmor %vm797_vm8, %vm798_vm7  ;;  %vm807_vm11 = vweird.f32 %v789_v5 }
 0x6c6   :  { %v793_v10 = vmul.f32 %v2224_v4, %v792_v6 }
 0x6c8   :  { %v794_v13 = vmul.f32 0.5, %v793_v10  ;;  %v784_v14 = vpop.xlane.xlu0 %783 }
 0x6c9   :  { %v787_v15 = vmul.f32 %v784_v14, %v2747_v29 }
 0x6ca   :  { %v795_v59 = vsub.f32 1.5, %v794_v13 }
 0x6cb   :  { %v2226_v17 = vpop.eup %2225  ;;  %v790_v23 = vadd.f32 1e-05, %v787_v15 }
 0x6cc   :  { %v796_v18 = vmul.f32 %v2224_v4, %v795_v59  ;;  %v802_v26 = vmul.f32 %v2226_v17, %v789_v5  ;;  %vm808_vm10 = vweird.f32 %v2226_v17 }
 0x6cd   :  { %2227 = vrsqrt.f32 %v790_v23  ;;  %vm809_vm12 = vmor %vm807_vm11, %vm808_vm10  ;;  %vm817_vm14 = vweird.f32 %v790_v23 }
 0x6ce   :  { %v800_v21 = vsel %vm799_vm9, %v2224_v4, %v796_v18  ;;  %v803_v30 = vmul.f32 %v2226_v17, %v802_v26 }
 0x6cf   :  { %v821_v12 = vmul.f32 %v800_v21, %v2750_v41  ;;  %v892_v41 = vld [vmem:[%s3270_s12 + $0x30] sm:$0xff] }
 0x6d0   :  { %v804_v34 = vmul.f32 0.5, %v803_v30  ;;  %915 = vmatpush.msrb.mxu3 %v892_v41  ;;  %v2046_v41 = vld [vmem:[%s3264_s6 + $0xe0] sm:$0xff] }
 0x6d1   :  { %v827_v35 = vmul.f32 %v2158_v7, %v821_v12 }
 0x6d2   :  { %v805_v36 = vsub.f32 1.5, %v804_v34  ;;  %916 = vmatpush.msrb.mxu3 %v891_v45  ;;  %v2042_v45 = vld [vmem:[%s3264_s6 + $0xc0] sm:$0xff] }
 0x6d3   :  { %v2228_v37 = vpop.eup %2227  ;;  %v833_v38 = vadd.f32 %v2159_v31, %v827_v35 }
 0x6d4   :  { %v806_v16 = vmul.f32 %v2226_v17, %v805_v36  ;;  %v812_v40 = vmul.f32 %v2228_v37, %v790_v23  ;;  %vm818_vm13 = vweird.f32 %v2228_v37  ;;  %917 = vmatpush.msrb.mxu3 %v890_v20  ;;  %v2041_v20 = vld [vmem:[%s3264_s6 + $0xb8] sm:$0xff] }
 0x6d5   :  { %2031 = vmatmul.msk.f32.vlgmr.msrb.gmra.mxu0 %vm157_vm1, %v833_v38  ;;  %vm819_vm15 = vmor %vm817_vm14, %vm818_vm13 }
 0x6d6   :  { %v810_v32 = vsel %vm809_vm12, %v2226_v17, %v806_v16  ;;  %v813_v42 = vmul.f32 %v2228_v37, %v812_v40  ;;  %918 = vmatpush.msrb.mxu3 %v889_v53  ;;  %v2048_v16 = vld [vmem:[%s3264_s6 + $0xf0] sm:$0xff]  ;;  %v2049_v40 = vld [vmem:[%s3264_s6 + $0xf8] sm:$0xff] }
 0x6d7   :  { %v822_v44 = vmul.f32 %v810_v32, %v2756_v46  ;;  %1056 = vmatpush.msra.mxu0 %v2048_v16  ;;  %1082 = vmatpush.msrb.mxu2 %v2049_v40  ;;  %v2047_v32 = vld [vmem:[%s3264_s6 + $0xe8] sm:$0xff]  ;;  %v2036_v53 = vld [vmem:[%s3264_s6 + $0x90] sm:$0xff] }
 0x6d8   :  { %v814_v48 = vmul.f32 0.5, %v813_v42  ;;  %919 = vmatpush.msrb.mxu3 %v888_v43  ;;  %2135 = vmatpush.msra.mxu1 %v2048_v16  ;;  %v2044_v42 = vld [vmem:[%s3264_s6 + $0xd0] sm:$0xff] }
 0x6d9   :  { %v828_v22 = vmul.f32 %v2158_v7, %v822_v44  ;;  %1057 = vmatpush.msra.mxu0 %v2046_v41  ;;  %1083 = vmatpush.msrb.mxu2 %v2047_v32  ;;  %v2045_v44 = vld [vmem:[%s3264_s6 + $0xd8] sm:$0xff] }
 0x6da   :  { %v815_v49 = vsub.f32 1.5, %v814_v48  ;;  %920 = vmatpush.msrb.mxu3 %v887_v57  ;;  %2136 = vmatpush.msra.mxu1 %v2046_v41  ;;  %v2043_v48 = vld [vmem:[%s3264_s6 + $0xc8] sm:$0xff] }
 0x6db   :  { %v834_v51 = vadd.f32 %v2159_v31, %v828_v22  ;;  %1058 = vmatpush.msra.mxu0 %v2044_v42  ;;  %1084 = vmatpush.msrb.mxu2 %v2045_v44  ;;  %v2040_v22 = vld [vmem:[%s3264_s6 + $0xb0] sm:$0xff] }
 0x6dc   :  { %v816_v46 = vmul.f32 %v2228_v37, %v815_v49  ;;  %921 = vmatpush.msrb.mxu3 %v886_v58  ;;  %2137 = vmatpush.msra.mxu1 %v2044_v42  ;;  %v2038_v49 = vld [vmem:[%s3264_s6 + $0xa0] sm:$0xff] }
 0x6dd   :  { %2032 = vmatmul.msk.f32.gmra.mxu0 %vm157_vm1, %v834_v51  ;;  %1085 = vmatpush.msrb.mxu2 %v2043_v48 }
 0x6de   :  { %v820_v54 = vsel %vm819_vm15, %v2228_v37, %v816_v46  ;;  %2143 = vmatpush.msra.mxu3 %v2049_v40  ;;  %1059 = vmatpush.msra.mxu0 %v2042_v45  ;;  %v2037_v46 = vld [vmem:[%s3264_s6 + $0x98] sm:$0xff] }
 0x6df   :  { %v823_v55 = vmul.f32 %v820_v54, %v2762_v50  ;;  %v2160_v50 = vld [vmem:[%s3269_s11] ss:$0 sm:$0xff]  ;;  %2138 = vmatpush.msra.mxu1 %v2042_v45  ;;  %1086 = vmatpush.msrb.mxu2 %v2041_v20 }
 0x6e0   :  { %2144 = vmatpush.msra.mxu3 %v2047_v32  ;;  %1060 = vmatpush.msra.mxu0 %v2040_v22  ;;  %v2034_v54 = vld [vmem:[%s3264_s6 + $0x80] sm:$0xff] }
 0x6e1   :  { %v829_v56 = vmul.f32 %v2158_v7, %v823_v55  ;;  %2139 = vmatpush.msra.mxu1 %v2040_v22  ;;  %v2035_v55 = vld [vmem:[%s3264_s6 + $0x88] sm:$0xff] }
 0x6e2   :  { %2145 = vmatpush.msra.mxu3 %v2045_v44  ;;  %1061 = vmatpush.msra.mxu0 %v2038_v49 }
 0x6e3   :  { %v835_v28 = vadd.f32 %v2159_v31, %v829_v56  ;;  %2140 = vmatpush.msra.mxu1 %v2038_v49 }
 0x6e4   :  { %2146 = vmatpush.msra.mxu3 %v2043_v48  ;;  %1062 = vmatpush.msra.mxu0 %v2036_v53 }
 0x6e5   :  { %2033 = vmatmul.msk.f32.gmra.mxu0 %vm157_vm1, %v835_v28  ;;  %2141 = vmatpush.msra.mxu1 %v2036_v53 }
 0x6e6   :  { %2147 = vmatpush.msra.mxu3 %v2041_v20  ;;  %1063 = vmatpush.msra.mxu0 %v2034_v54 }
 0x6e7   :  { %2142 = vmatpush.msra.mxu1 %v2034_v54 }
 0x752   :  { %v874_v62 = vpop.f32.mrf.mxu0 }
 0x753   :  { %v875_v63 = vadd.f32 %v2160_v50, %v874_v62 }
 0x755   :  { %v883_v0 = vmax.f32 %v875_v63, 0.0 }
 0x757   :  { %922 = vmatmul.f32.vlgmr.msrb.gmra.mxu3 %v883_v0 }
 0x75a   :  { %v877_v1 = vpop.f32.mrf.mxu0 }
 0x75b   :  { %v878_v2 = vadd.f32 %v2160_v50, %v877_v1 }
 0x75d   :  { %v884_v3 = vmax.f32 %v878_v2, 0.0 }
 0x75f   :  { %925 = vmatmul.f32.gmra.mxu3 %v884_v3 }
 0x762   :  { %v880_v4 = vpop.f32.mrf.mxu0 }
 0x763   :  { %v881_v5 = vadd.f32 %v2160_v50, %v880_v4 }
 0x765   :  { %v885_v6 = vmax.f32 %v881_v5, 0.0 }
 0x767   :  { %928 = vmatmul.f32.gmra.mxu3 %v885_v6 }
 0x7da   :  { %v923_v9 = vpop.f32.mrf.mxu3 }
 0x7db   :  { %v924_v10 = vadd.f32 %v2161_v8, %v923_v9 }
 0x7dd   :  { %v932_v11 = vadd.f32 %v924_v10, %v833_v38  ;;  %v2162_v10 = vld [vmem:[%s3274_s16] ss:$0 sm:$0xff] }
 0x7df   :  { %v937_v13 = vsel %vm157_vm1, %v932_v11, 0.0 }
 0x7e0   :  { %938 = vadd.xlane.f32.xlu0 %v937_v13 }
 0x7e2   :  { %v926_v14 = vpop.f32.mrf.mxu3 }
 0x7e3   :  { %v927_v15 = vadd.f32 %v2161_v8, %v926_v14 }
 0x7e5   :  { %v933_v19 = vadd.f32 %v927_v15, %v834_v51  ;;  %v2039_v51 = vld [vmem:[%s3264_s6 + $0xa8] sm:$0xff]  ;;  %v2163_v15 = vld [vmem:[%s3275_s17] ss:$0 sm:$0xff] }
 0x7e6   :  { %1087 = vmatpush.msrb.mxu2 %v2039_v51  ;;  %2148 = vmatpush.msra.mxu3 %v2039_v51 }
 0x7e7   :  { %v940_v59 = vsel %vm157_vm1, %v933_v19, 0.0 }
 0x7e8   :  { %941 = vadd.xlane.f32.xlu1 %v940_v59  ;;  %1088 = vmatpush.msrb.mxu2 %v2037_v46 }
 0x7e9   :  { %2149 = vmatpush.msra.mxu3 %v2037_v46 }
 0x7ea   :  { %v929_v17 = vpop.f32.mrf.mxu3  ;;  %1089 = vmatpush.msrb.mxu2 %v2035_v55 }
 0x7eb   :  { %v930_v23 = vadd.f32 %v2161_v8, %v929_v17  ;;  %2150 = vmatpush.msra.mxu3 %v2035_v55 }
 0x7ed   :  { %v934_v25 = vadd.f32 %v930_v23, %v835_v28 }
 0x7ef   :  { %v943_v18 = vsel %vm756_vm5, %v934_v25, 0.0 }
 0x7f0   :  { %944 = vadd.xlane.f32.xlu2 %v943_v18 }
 0x853   :  { %v939_v26 = vpop.xlane.xlu0 %938 }
 0x854   :  { %v946_v7 = vmul.f32 %v939_v26, %v2747_v29 }
 0x856   :  { %v2840_v27 = vsub.f32 %v932_v11, %v946_v7 }
 0x858   :  { %v952_v21 = vmul.f32 %v2840_v27, %v2840_v27 }
 0x85a   :  { %v955_v30 = vsel %vm157_vm1, %v952_v21, 0.0 }
 0x85b   :  { %956 = vadd.xlane.f32.xlu0 %v955_v30  ;;  %v942_v12 = vpop.xlane.xlu1 %941 }
 0x85c   :  { %v947_v31 = vmul.f32 %v942_v12, %v2747_v29 }
 0x85e   :  { %v2846_v33 = vsub.f32 %v933_v19, %v947_v31 }
 0x860   :  { %v953_v34 = vmul.f32 %v2846_v33, %v2846_v33 }
 0x862   :  { %v958_v35 = vsel %vm157_vm1, %v953_v34, 0.0 }
 0x863   :  { %v945_v24 = vpop.xlane.xlu2 %944  ;;  %959 = vadd.xlane.f32.xlu1 %v958_v35 }
 0x864   :  { %v948_v36 = vmul.f32 %v945_v24, %v2747_v29 }
 0x866   :  { %v2852_v37 = vsub.f32 %v934_v25, %v948_v36 }
 0x868   :  { %v954_v38 = vmul.f32 %v2852_v37, %v2852_v37 }
 0x86a   :  { %v961_v39 = vsel %vm756_vm5, %v954_v38, 0.0 }
 0x86b   :  { %962 = vadd.xlane.f32.xlu2 %v961_v39  ;;  %v2050_v39 = vld [vmem:[%s3265_s7 + $0x2] sm:$0x3] }
 0x86c   :  { %v1035_v16 = vperm.slane %v2050_v39, 0  ;;  %v1036_v48 = vperm.slane %v2050_v39, 1 }
 0x8ce   :  { %v957_v56 = vpop.xlane.xlu0 %956 }
 0x8cf   :  { %v964_v28 = vmul.f32 %v957_v56, %v2747_v29 }
 0x8d1   :  { %v967_v43 = vadd.f32 1e-05, %v964_v28 }
 0x8d3   :  { %2229 = vrsqrt.f32 %v967_v43  ;;  %vm976_vm6 = vweird.f32 %v967_v43 }
 0x8d6   :  { %v960_v57 = vpop.xlane.xlu1 %959 }
 0x8d7   :  { %v965_v58 = vmul.f32 %v960_v57, %v2747_v29 }
 0x8d9   :  { %v2230_v50 = vpop.eup %2229  ;;  %v968_v62 = vadd.f32 1e-05, %v965_v58 }
 0x8da   :  { %v971_v63 = vmul.f32 %v2230_v50, %v967_v43  ;;  %vm977_vm0 = vweird.f32 %v2230_v50 }
 0x8db   :  { %2231 = vrsqrt.f32 %v968_v62  ;;  %vm978_vm7 = vmor %vm976_vm6, %vm977_vm0  ;;  %vm986_vm9 = vweird.f32 %v968_v62 }
 0x8dc   :  { %v972_v0 = vmul.f32 %v2230_v50, %v971_v63 }
 0x8de   :  { %v973_v1 = vmul.f32 0.5, %v972_v0  ;;  %v963_v2 = vpop.xlane.xlu2 %962 }
 0x8df   :  { %v966_v3 = vmul.f32 %v963_v2, %v2747_v29 }
 0x8e0   :  { %v974_v4 = vsub.f32 1.5, %v973_v1 }
 0x8e1   :  { %v2232_v5 = vpop.eup %2231  ;;  %v969_v6 = vadd.f32 1e-05, %v966_v3 }
 0x8e2   :  { %v975_v8 = vmul.f32 %v2230_v50, %v974_v4  ;;  %v981_v9 = vmul.f32 %v2232_v5, %v968_v62  ;;  %vm987_vm8 = vweird.f32 %v2232_v5 }
 0x8e3   :  { %2233 = vrsqrt.f32 %v969_v6  ;;  %vm988_vm10 = vmor %vm986_vm9, %vm987_vm8  ;;  %vm996_vm12 = vweird.f32 %v969_v6 }
 0x8e4   :  { %v979_v11 = vsel %vm978_vm7, %v2230_v50, %v975_v8  ;;  %v982_v13 = vmul.f32 %v2232_v5, %v981_v9 }
 0x8e5   :  { %v1000_v14 = vmul.f32 %v979_v11, %v2840_v27 }
 0x8e6   :  { %v983_v19 = vmul.f32 0.5, %v982_v13 }
 0x8e7   :  { %v1006_v59 = vmul.f32 %v2162_v10, %v1000_v14 }
 0x8e8   :  { %v984_v17 = vsub.f32 1.5, %v983_v19 }
 0x8e9   :  { %v2234_v23 = vpop.eup %2233  ;;  %v2915_v25 = vadd.f32 %v2163_v15, %v1006_v59  ;;  %v3005_v59 = vld [vmem:[%s3291_s23] sm:$0xff] }
 0x8ea   :  { %v985_v18 = vmul.f32 %v2232_v5, %v984_v17  ;;  %v991_v26 = vmul.f32 %v2234_v23, %v969_v6  ;;  %vm997_vm11 = vweird.f32 %v2234_v23 }
 0x8eb   :  { %2051 = vmatmul.msk.f32.vlgmr.msra.gmra.mxu0 %vm157_vm1, %v2915_v25  ;;  %2054 = vmatmul.msk.f32.vlgmr.msrb.gmra.mxu2 %vm157_vm1, %v2915_v25  ;;  %vm998_vm13 = vmor %vm996_vm12, %vm997_vm11 }
 0x8ec   :  { %v989_v7 = vsel %vm988_vm10, %v2232_v5, %v985_v18  ;;  %v992_v27 = vmul.f32 %v2234_v23, %v991_v26  ;;  %v3012_v26 = vld [vmem:[%s3291_s23 + $0x8] sm:$0xff] }
 0x8ed   :  { %v1001_v21 = vmul.f32 %v989_v7, %v2846_v33 }
 0x8ee   :  { %v993_v30 = vmul.f32 0.5, %v992_v27 }
 0x8ef   :  { %v1007_v12 = vmul.f32 %v2162_v10, %v1001_v21  ;;  %v3019_v21 = vld [vmem:[%s3291_s23 + $0x10] sm:$0xf] }
 0x8f0   :  { %v994_v31 = vsub.f32 1.5, %v993_v30 }
 0x8f1   :  { %v2922_v34 = vadd.f32 %v2163_v15, %v1007_v12 }
 0x8f2   :  { %v995_v35 = vmul.f32 %v2234_v23, %v994_v31 }
 0x8f3   :  { %2052 = vmatmul.msk.f32.vlgmr.msra.gmra.mxu1 %vm157_vm1, %v2922_v34  ;;  %2055 = vmatmul.msk.f32.vlgmr.msra.gmra.mxu3 %vm157_vm1, %v2922_v34 }
 0x8f4   :  { %v999_v24 = vsel %vm998_vm13, %v2234_v23, %v995_v35 }
 0x8f5   :  { %v1002_v36 = vmul.f32 %v999_v24, %v2852_v37 }
 0x8f7   :  { %v1008_v38 = vmul.f32 %v2162_v10, %v1002_v36 }
 0x8f9   :  { %v2929_v33 = vadd.f32 %v2163_v15, %v1008_v38 }
 0x8fb   :  { %2053 = vmatmul.msk.f32.gmra.mxu1 %vm157_vm1, %v2929_v33  ;;  %2056 = vmatmul.msk.f32.gmra.mxu3 %vm157_vm1, %v2929_v33 }
 0x968   :  { %v1065_v40 = vpop.f32.mrf.mxu0 }
 0x969   :  { %v1066_v41 = vadd.f32 %v1065_v40, %v1035_v16 }
 0x96b   :  { %1109 = vrot.lane.b32.xlu0 %v1066_v41, %s2333_s29  ;;  %v2958_v0 = vmul.f32 0.25, %v1066_v41 }
 0x96d   :  { %v1103_v3 = vmul.f32 %v2958_v0, %v2547_v47  ;;  %v1192_v4 = vmul.f32 %v2958_v0, %v2568_v60  ;;  %v1342_v15 = vmul.f32 %v2958_v0, %v2570_v61 }
 0x96e   :  { %v1091_v22 = vpop.f32.mrf.mxu2 }
 0x96f   :  { %v1092_v53 = vadd.f32 %v1091_v22, %v1036_v48 }
 0x970   :  { %v1068_v32 = vpop.f32.mrf.mxu1 }
 0x971   :  { %v1069_v37 = vadd.f32 %v1068_v32, %v1035_v16  ;;  %v1263_v28 = vmul.f32 %v1092_v53, %v2568_v60  ;;  %v1189_v43 = vmul.f32 %v1092_v53, %v2547_v47  ;;  %v1528_v50 = vmul.f32 %v1092_v53, %v2553_v52 }
 0x972   :  { %v1413_v6 = vmul.f32 %v1092_v53, %v2570_v61 }
 0x973   :  { %1111 = vrot.lane.b32.xlu2 %v1069_v37, %s2333_s29  ;;  %v2975_v8 = vmul.f32 0.25, %v1069_v37 }
 0x975   :  { %v1104_v9 = vmul.f32 %v2975_v8, %v2547_v47  ;;  %v1193_v10 = vmul.f32 %v2975_v8, %v2568_v60  ;;  %v1343_v19 = vmul.f32 %v2975_v8, %v2570_v61 }
 0x976   :  { %v1094_v42 = vpop.f32.mrf.mxu3 }
 0x977   :  { %v1095_v49 = vadd.f32 %v1094_v42, %v1036_v48 }
 0x978   :  { %v1071_v44 = vpop.f32.mrf.mxu1 }
 0x979   :  { %v1072_v45 = vadd.f32 %v1071_v44, %v1035_v16  ;;  %v1264_v55 = vmul.f32 %v1095_v49, %v2568_v60  ;;  %v1190_v56 = vmul.f32 %v1095_v49, %v2547_v47  ;;  %v1529_v58 = vmul.f32 %v1095_v49, %v2553_v52 }
 0x97a   :  { %v1414_v5 = vmul.f32 %v1095_v49, %v2570_v61 }
 0x97b   :  { %1113 = vrot.lane.b32.xlu1 %v1072_v45, %s2333_s29  ;;  %v2985_v11 = vmul.f32 0.25, %v1072_v45 }
 0x97d   :  { %v1105_v13 = vmul.f32 %v2985_v11, %v2547_v47  ;;  %v1194_v14 = vmul.f32 %v2985_v11, %v2568_v60 }
 0x97e   :  { %v1097_v20 = vpop.f32.mrf.mxu3 }
 0x97f   :  { %v1098_v51 = vadd.f32 %v1097_v20, %v1036_v48 }
 0x981   :  { %v1191_v46 = vmul.f32 %v1098_v51, %v2547_v47  ;;  %v1265_v54 = vmul.f32 %v1098_v51, %v2568_v60  ;;  %v1530_v57 = vmul.f32 %v1098_v51, %v2553_v52  ;;  %v1415_v2 = vmul.f32 %v1098_v51, %v2570_v61 }
 0x982   :  { %v1344_v47 = vmul.f32 %v2985_v11, %v2570_v61 }
 0x983   :  { %2069 = vmatpush.msk.msra.mxu2 %vm398_vm2, %v1265_v54  ;;  %2073 = vmatpush.msk.msrb.mxu3 %vm398_vm2, %v1191_v46 }
 0x985   :  { %1292 = vmatpush.msra.mxu2 %v1264_v55  ;;  %1330 = vmatpush.msrb.mxu3 %v1190_v56 }
 0x987   :  { %1293 = vmatpush.msra.mxu2 %v1263_v28  ;;  %1331 = vmatpush.msrb.mxu3 %v1189_v43 }
 0x989   :  { %2093 = vmatpush.msk.msra.mxu3 %vm398_vm2, %v1530_v57 }
 0x98b   :  { %1557 = vmatpush.msra.mxu3 %v1529_v58 }
 0x98d   :  { %1558 = vmatpush.msra.mxu3 %v1528_v50 }
 0x9cd   :  { %v1112_v63 = vpop.permute.xlu2 %1111 }
 0x9dd   :  { %v1110_v1 = vpop.permute.xlu0 %1109 }
 0x9ed   :  { %v1114_v62 = vpop.permute.xlu1 %1113 }
 0x9ee   :  { %2057 = vmatpush.xpose.msk.msrb.mxu0 %vm157_vm1, %v1114_v62  ;;  %2063 = vmatpush.xpose.msk.msrb.mxu1 %vm157_vm1, %v1114_v62 }
 0x9ef   :  { %2087 = vmatpush.xpose.msk.msrb.mxu2 %vm157_vm1, %v1114_v62 }
 0x9f2   :  { %2058 = vmatpush.xpose.msk.msrb.mxu0 %vm157_vm1, %v1112_v63  ;;  %2064 = vmatpush.xpose.msk.msrb.mxu1 %vm157_vm1, %v1112_v63 }
 0x9f3   :  { %2088 = vmatpush.xpose.msk.msrb.mxu2 %vm157_vm1, %v1112_v63 }
 0x9f6   :  { %2059 = vmatpush.xpose.msk.msrb.mxu0 %vm157_vm1, %v1110_v1  ;;  %2065 = vmatpush.xpose.msk.msrb.mxu1 %vm157_vm1, %v1110_v1 }
 0x9f7   :  { %2089 = vmatpush.xpose.msk.msrb.mxu2 %vm157_vm1, %v1110_v1 }
 0x9f9   :  { %2060 = vmatmul.msk.f32.vlgmr.msrb.gmra.mxu0 %vm157_vm1, %v1103_v3  ;;  %2066 = vmatmul.msk.f32.vlgmr.msrb.gmra.mxu1 %vm157_vm1, %v1192_v4 }
 0x9fa   :  { %2077 = vmatpush.xpose.msk.msra.mxu0 %vm157_vm1, %v1114_v62  ;;  %2083 = vmatpush.msk.msra.mxu1 %vm398_vm2, %v1415_v2 }
 0x9fc   :  { %1442 = vmatpush.msra.mxu1 %v1414_v5 }
 0x9fe   :  { %2078 = vmatpush.xpose.msk.msra.mxu0 %vm157_vm1, %v1112_v63  ;;  %1443 = vmatpush.msra.mxu1 %v1413_v6  ;;  %v1457_v6 = vmul.f32 %v2958_v0, %v2553_v52 }
 0xa01   :  { %2061 = vmatmul.msk.f32.gmra.mxu0 %vm157_vm1, %v1104_v9  ;;  %2067 = vmatmul.msk.f32.gmra.mxu1 %vm157_vm1, %v1193_v10  ;;  %v1458_v9 = vmul.f32 %v2975_v8, %v2553_v52  ;;  %v1459_v10 = vmul.f32 %v2985_v11, %v2553_v52 }
 0xa02   :  { %2079 = vmatpush.xpose.msk.msra.mxu0 %vm157_vm1, %v1110_v1 }
 0xa09   :  { %2062 = vmatmul.msk.f32.gmra.mxu0 %vm157_vm1, %v1105_v13  ;;  %2068 = vmatmul.msk.f32.gmra.mxu1 %vm157_vm1, %v1194_v14 }
 0xa11   :  { %2080 = vmatmul.msk.f32.vlgmr.msra.gmra.mxu0 %vm157_vm1, %v1342_v15 }
 0xa19   :  { %2081 = vmatmul.msk.f32.gmra.mxu0 %vm157_vm1, %v1343_v19 }
 0xa21   :  { %2082 = vmatmul.msk.f32.gmra.mxu0 %vm157_vm1, %v1344_v47 }
 0xa76   :  { %v1221_v60 = vpop.f32.mrf.mxu1  ;;  %v1147_v31 = vpop.f32.mrf.mxu0 }
 0xa77   :  { %v1222_v17 = vadd.f32 %v3005_v59, %v1221_v60  ;;  %v1148_v37 = vadd.f32 %v3005_v59, %v1147_v31 }
 0xa79   :  { %v1230_v23 = vsel %vm276_vm3, %v1222_v17, -inf  ;;  %v1156_v20 = vsel %vm276_vm3, %v1148_v37, -inf }
 0xa7a   :  { %1231 = vmax.xlane.f32.xlu1 %v1230_v23 }
 0xa7e   :  { %v1224_v18 = vpop.f32.mrf.mxu1  ;;  %v1150_v39 = vpop.f32.mrf.mxu0 }
 0xa7f   :  { %v1225_v61 = vadd.f32 %v3012_v26, %v1224_v18  ;;  %v1151_v51 = vadd.f32 %v3012_v26, %v1150_v39 }
 0xa81   :  { %v1233_v7 = vsel %vm276_vm3, %v1225_v61, -inf  ;;  %v1159_v54 = vsel %vm276_vm3, %v1151_v51, -inf }
 0xa82   :  { %1234 = vmax.xlane.f32.xlu0 %v1233_v7 }
 0xa86   :  { %v1227_v27 = vpop.f32.mrf.mxu1  ;;  %v1153_v48 = vpop.f32.mrf.mxu0 }
 0xa87   :  { %v1228_v30 = vadd.f32 %v3019_v21, %v1227_v27  ;;  %v1154_v56 = vadd.f32 %v3019_v21, %v1153_v48 }
 0xa89   :  { %v1236_v12 = vsel %vm283_vm4, %v1228_v30, -inf  ;;  %v1162_v43 = vsel %vm283_vm4, %v1154_v56, -inf }
 0xa8a   :  { %1237 = vmax.xlane.f32.xlu2 %v1236_v12 }
 0xa8e   :  { %v1371_v55 = vpop.f32.mrf.mxu0 }
 0xa8f   :  { %v3032_v28 = vadd.f32 %v3005_v59, %v1371_v55 }
 0xa91   :  { %v1380_v57 = vsel %vm276_vm3, %v3032_v28, -inf }
 0xa96   :  { %v1374_v47 = vpop.f32.mrf.mxu0 }
 0xa97   :  { %v1375_v52 = vadd.f32 %v3012_v26, %v1374_v47 }
 0xa99   :  { %v1383_v31 = vsel %vm276_vm3, %v1375_v52, -inf }
 0xaed   :  { %v1232_v35 = vpop.xlane.xlu1 %1231 }
 0xaee   :  { %v1239_v24 = vsub.f32 %v1222_v17, %v1232_v35 }
 0xaf0   :  { %v1242_v36 = vmul.f32 1.442695, %v1239_v24 }
 0xaf2   :  { %2235 = vpow2.f32 %v1242_v36 }
 0xaf5   :  { %v1235_v38 = vpop.xlane.xlu0 %1234 }
 0xaf6   :  { %v1240_v16 = vsub.f32 %v1225_v61, %v1235_v38 }
 0xaf8   :  { %v2236_v40 = vpop.eup %2235  ;;  %v1244_v41 = vmul.f32 1.442695, %v1240_v16 }
 0xaf9   :  { %v1248_v32 = vsel %vm276_vm3, %v2236_v40, 0.0 }
 0xafa   :  { %2237 = vpow2.f32 %v1244_v41  ;;  %1249 = vadd.xlane.f32.xlu1 %v1248_v32 }
 0xafd   :  { %v1238_v42 = vpop.xlane.xlu2 %1237 }
 0xafe   :  { %v1241_v44 = vsub.f32 %v1228_v30, %v1238_v42  ;;  %v1377_v30 = vpop.f32.mrf.mxu0 }
 0xaff   :  { %v1378_v35 = vadd.f32 %v3019_v21, %v1377_v30 }
 0xb00   :  { %v2238_v45 = vpop.eup %2237  ;;  %v1246_v22 = vmul.f32 1.442695, %v1241_v44 }
 0xb01   :  { %v1251_v49 = vsel %vm276_vm3, %v2238_v45, 0.0 }
 0xb02   :  { %2239 = vpow2.f32 %v1246_v22  ;;  %1157 = vmax.xlane.f32.xlu1 %v1156_v20  ;;  %1252 = vadd.xlane.f32.xlu0 %v1251_v49 }
 0xb08   :  { %v2240_v53 = vpop.eup %2239 }
 0xb09   :  { %v1254_v46 = vsel %vm283_vm4, %v2240_v53, 0.0 }
 0xb0a   :  { %1255 = vadd.xlane.f32.xlu2 %v1254_v46  ;;  %1160 = vmax.xlane.f32.xlu0 %v1159_v54 }
 0xb12   :  { %1163 = vmax.xlane.f32.xlu2 %v1162_v43  ;;  %1381 = vmax.xlane.f32.xlu0 %v1380_v57 }
 0xb6d   :  { %v1250_v58 = vpop.xlane.xlu1 %1249 }
 0xb6e   :  { %2241 = vrcp.f32 %v1250_v58 }
 0xb74   :  { %v2242_v50 = vpop.eup %2241 }
 0xb75   :  { %v1260_v62 = vmul.f32 %v2242_v50, %v2236_v40  ;;  %v1253_v63 = vpop.xlane.xlu0 %1252  ;;  %v1158_v19 = vpop.xlane.xlu1 %1157 }
 0xb76   :  { %2243 = vrcp.f32 %v1253_v63  ;;  %v1165_v17 = vsub.f32 %v1148_v37, %v1158_v19 }
 0xb77   :  { %2070 = vmatmul.msk.f32.vlgmr.msra.gmra.mxu2 %vm276_vm3, %v1260_v62 }
 0xb78   :  { %v1168_v23 = vmul.f32 1.442695, %v1165_v17 }
 0xb7c   :  { %v2244_v1 = vpop.eup %2243 }
 0xb7d   :  { %v1256_v2 = vpop.xlane.xlu2 %1255  ;;  %v1261_v3 = vmul.f32 %v2244_v1, %v2238_v45  ;;  %v1161_v18 = vpop.xlane.xlu0 %1160 }
 0xb7e   :  { %2245 = vrcp.f32 %v1256_v2  ;;  %v1166_v12 = vsub.f32 %v1151_v51, %v1161_v18 }
 0xb7f   :  { %2071 = vmatmul.msk.f32.gmra.mxu2 %vm276_vm3, %v1261_v3  ;;  %2247 = vpow2.f32 %v1168_v23 }
 0xb80   :  { %v1170_v36 = vmul.f32 1.442695, %v1166_v12 }
 0xb84   :  { %v2246_v4 = vpop.eup %2245 }
 0xb85   :  { %v1262_v5 = vmul.f32 %v2246_v4, %v2240_v53  ;;  %v1164_v11 = vpop.xlane.xlu2 %1163  ;;  %v2248_v38 = vpop.eup %2247 }
 0xb86   :  { %v1167_v27 = vsub.f32 %v1154_v56, %v1164_v11  ;;  %v1382_v39 = vpop.xlane.xlu0 %1381  ;;  %v1174_v32 = vsel %vm276_vm3, %v2248_v38, 0.0 }
 0xb87   :  { %2072 = vmatmul.msk.f32.gmra.mxu2 %vm276_vm3, %v1262_v5  ;;  %v1389_v41 = vsub.f32 %v3032_v28, %v1382_v39  ;;  %v2104_v39 = vld [vmem:[%s3266_s8 + $0x78] sm:$0xff] }
 0xb88   :  { %v1172_v24 = vmul.f32 1.442695, %v1167_v27  ;;  %1603 = vmatpush.msrb.mxu0 %v2104_v39  ;;  %v1714_v39 = vld [vmem:[#allocation2 + $0x78] sm:$0xff] }
 0xb89   :  { %v1392_v42 = vmul.f32 1.442695, %v1389_v41  ;;  %1737 = vmatpush.msrb.mxu1 %v1714_v39  ;;  %v2117_v39 = vld [vmem:[%s3270_s12 + $0x90] sm:$0xff] }
 0xb8a   :  { %2249 = vpow2.f32 %v1172_v24 }
 0xb8b   :  { %2251 = vpow2.f32 %v1170_v36 }
 0xb8c   :  { %2253 = vpow2.f32 %v1392_v42  ;;  %v2102_v42 = vld [vmem:[%s3266_s8 + $0x68] sm:$0xff] }
 0xb8f   :  { %2090 = vmatmul.msk.f32.vlgmr.msrb.gmra.mxu2 %vm157_vm1, %v1457_v6 }
 0xb90   :  { %v2250_v44 = vpop.eup %2249 }
 0xb91   :  { %v2252_v45 = vpop.eup %2251  ;;  %v1180_v48 = vsel %vm283_vm4, %v2250_v44, 0.0 }
 0xb92   :  { %v2254_v22 = vpop.eup %2253 }
 0xb93   :  { %v1398_v20 = vsel %vm276_vm3, %v2254_v22, 0.0 }
 0xb97   :  { %2091 = vmatmul.msk.f32.gmra.mxu2 %vm157_vm1, %v1458_v9 }
 0xb9f   :  { %2092 = vmatmul.msk.f32.gmra.mxu2 %vm157_vm1, %v1459_v10 }
 0xbfa   :  { %v3049_v13 = vpop.f32.mrf.mxu2 }
 0xc02   :  { %v3051_v14 = vpop.f32.mrf.mxu2 }
 0xc0a   :  { %v3053_v15 = vpop.f32.mrf.mxu2 }
 0xc12   :  { %v1486_v0 = vpop.f32.mrf.mxu2 }
 0xc13   :  { %v1487_v60 = vadd.f32 %v3005_v59, %v1486_v0 }
 0xc15   :  { %v1495_v8 = vsel %vm276_vm3, %v1487_v60, -inf }
 0xc16   :  { %1496 = vmax.xlane.f32.xlu1 %v1495_v8 }
 0xc1a   :  { %v1489_v61 = vpop.f32.mrf.mxu2 }
 0xc1b   :  { %v1490_v7 = vadd.f32 %v3012_v26, %v1489_v61  ;;  %v1386_v26 = vsel %vm283_vm4, %v1378_v35, -inf }
 0xc1d   :  { %v1498_v59 = vsel %vm276_vm3, %v1490_v7, -inf }
 0xc1e   :  { %1384 = vmax.xlane.f32.xlu1 %v1383_v31  ;;  %1499 = vmax.xlane.f32.xlu2 %v1498_v59 }
 0xc22   :  { %v1492_v16 = vpop.f32.mrf.mxu2 }
 0xc23   :  { %v1493_v40 = vadd.f32 %v3019_v21, %v1492_v16  ;;  %v1177_v21 = vsel %vm276_vm3, %v2252_v45, 0.0  ;;  %v2103_v16 = vld [vmem:[%s3266_s8 + $0x70] sm:$0xff] }
 0xc24   :  { %1604 = vmatpush.msrb.mxu0 %v2103_v16  ;;  %v1713_v16 = vld [vmem:[#allocation2 + $0x70] sm:$0xff] }
 0xc25   :  { %v1501_v37 = vsel %vm283_vm4, %v1493_v40, -inf  ;;  %1738 = vmatpush.msrb.mxu1 %v1713_v16  ;;  %v2116_v16 = vld [vmem:[%s3270_s12 + $0x88] sm:$0xff] }
 0xc26   :  { %1175 = vadd.xlane.f32.xlu1 %v1174_v32  ;;  %1387 = vmax.xlane.f32.xlu2 %v1386_v26 }
 0xc27   :  { %1502 = vmax.xlane.f32.xlu0 %v1501_v37  ;;  %1605 = vmatpush.msrb.mxu0 %v2102_v42  ;;  %v1707_v42 = vld [vmem:[#allocation2 + $0x40] sm:$0xff] }
 0xc2e   :  { %1181 = vadd.xlane.f32.xlu2 %v1180_v48  ;;  %v2099_v48 = vld [vmem:[%s3266_s8 + $0x50] sm:$0xff] }
 0xc2f   :  { %1178 = vadd.xlane.f32.xlu0 %v1177_v21 }
 0xc37   :  { %1399 = vadd.xlane.f32.xlu0 %v1398_v20 }
 0xc89   :  { %v1497_v49 = vpop.xlane.xlu1 %1496 }
 0xc8a   :  { %v1504_v51 = vsub.f32 %v1487_v60, %v1497_v49 }
 0xc8c   :  { %v1507_v53 = vmul.f32 1.442695, %v1504_v51  ;;  %v2098_v51 = vld [vmem:[%s3266_s8 + $0x48] sm:$0xff] }
 0xc8e   :  { %2255 = vpow2.f32 %v1507_v53  ;;  %v2097_v53 = vld [vmem:[%s3266_s8 + $0x40] sm:$0xff] }
 0xc91   :  { %v1385_v46 = vpop.xlane.xlu1 %1384  ;;  %v1500_v54 = vpop.xlane.xlu2 %1499 }
 0xc92   :  { %v1390_v55 = vsub.f32 %v1375_v52, %v1385_v46  ;;  %v1505_v56 = vsub.f32 %v1490_v7, %v1500_v54 }
 0xc94   :  { %v2256_v28 = vpop.eup %2255  ;;  %v1394_v43 = vmul.f32 1.442695, %v1390_v55  ;;  %v1509_v57 = vmul.f32 1.442695, %v1505_v56 }
 0xc95   :  { %v1513_v58 = vsel %vm276_vm3, %v2256_v28, 0.0 }
 0xc96   :  { %2257 = vpow2.f32 %v1394_v43  ;;  %1514 = vadd.xlane.f32.xlu1 %v1513_v58 }
 0xc97   :  { %2259 = vpow2.f32 %v1509_v57 }
 0xc99   :  { %v1176_v50 = vpop.xlane.xlu1 %1175  ;;  %v1388_v62 = vpop.xlane.xlu2 %1387 }
 0xc9a   :  { %2261 = vrcp.f32 %v1176_v50  ;;  %v1391_v63 = vsub.f32 %v1378_v35, %v1388_v62  ;;  %v1503_v1 = vpop.xlane.xlu0 %1502 }
 0xc9b   :  { %v1506_v2 = vsub.f32 %v1493_v40, %v1503_v1 }
 0xc9c   :  { %v2258_v3 = vpop.eup %2257  ;;  %v1396_v4 = vmul.f32 1.442695, %v1391_v63 }
 0xc9d   :  { %v2260_v5 = vpop.eup %2259  ;;  %v1511_v6 = vmul.f32 1.442695, %v1506_v2  ;;  %v1401_v9 = vsel %vm276_vm3, %v2258_v3, 0.0 }
 0xc9e   :  { %2263 = vpow2.f32 %v1396_v4  ;;  %1402 = vadd.xlane.f32.xlu1 %v1401_v9  ;;  %v1516_v10 = vsel %vm276_vm3, %v2260_v5, 0.0 }
 0xc9f   :  { %2265 = vpow2.f32 %v1511_v6  ;;  %1517 = vadd.xlane.f32.xlu2 %v1516_v10 }
 0xca0   :  { %v2262_v19 = vpop.eup %2261 }
 0xca1   :  { %v1186_v0 = vmul.f32 %v2262_v19, %v2248_v38  ;;  %v1182_v23 = vpop.xlane.xlu2 %1181 }
 0xca2   :  { %v1179_v47 = vpop.xlane.xlu0 %1178 }
 0xca3   :  { %2267 = vrcp.f32 %v1179_v47  ;;  %2074 = vmatmul.msk.f32.vlgmr.msrb.gmra.mxu3 %vm276_vm3, %v1186_v0 }
 0xca4   :  { %v2264_v60 = vpop.eup %2263  ;;  %2269 = vrcp.f32 %v1182_v23 }
 0xca5   :  { %v2266_v17 = vpop.eup %2265  ;;  %v1404_v8 = vsel %vm283_vm4, %v2264_v60, 0.0 }
 0xca6   :  { %v1519_v18 = vsel %vm283_vm4, %v2266_v17, 0.0 }
 0xca7   :  { %1405 = vadd.xlane.f32.xlu2 %v1404_v8  ;;  %1520 = vadd.xlane.f32.xlu0 %v1519_v18 }
 0xca9   :  { %v2268_v52 = vpop.eup %2267 }
 0xcaa   :  { %v1400_v11 = vpop.xlane.xlu0 %1399  ;;  %v1187_v61 = vmul.f32 %v2268_v52, %v2252_v45  ;;  %v2270_v7 = vpop.eup %2269  ;;  %v2100_v45 = vld [vmem:[%s3266_s8 + $0x58] sm:$0xff] }
 0xcab   :  { %2271 = vrcp.f32 %v1400_v11  ;;  %v1188_v12 = vmul.f32 %v2270_v7, %v2250_v44  ;;  %v2101_v44 = vld [vmem:[%s3266_s8 + $0x60] sm:$0xff] }
 0xcac   :  { %2075 = vmatmul.msk.f32.gmra.mxu3 %vm276_vm3, %v1187_v61  ;;  %1606 = vmatpush.msrb.mxu0 %v2101_v44 }
 0xcae   :  { %1607 = vmatpush.msrb.mxu0 %v2100_v45 }
 0xcb0   :  { %1608 = vmatpush.msrb.mxu0 %v2099_v48 }
 0xcb1   :  { %v2272_v27 = vpop.eup %2271 }
 0xcb2   :  { %v1410_v30 = vmul.f32 %v2272_v27, %v2254_v22  ;;  %1609 = vmatpush.msrb.mxu0 %v2098_v51 }
 0xcb4   :  { %2076 = vmatmul.msk.f32.gmra.mxu3 %vm276_vm3, %v1188_v12  ;;  %2084 = vmatmul.msk.f32.vlgmr.msra.gmra.mxu1 %vm276_vm3, %v1410_v30 }
 0xcb5   :  { %1610 = vmatpush.msrb.mxu0 %v2097_v53 }
 0xd09   :  { %v1515_v31 = vpop.xlane.xlu1 %1514 }
 0xd0a   :  { %2273 = vrcp.f32 %v1515_v31 }
 0xd10   :  { %v2274_v59 = vpop.eup %2273 }
 0xd11   :  { %v1525_v35 = vmul.f32 %v2274_v59, %v2256_v28  ;;  %v1403_v24 = vpop.xlane.xlu1 %1402 }
 0xd12   :  { %2275 = vrcp.f32 %v1403_v24  ;;  %v1518_v36 = vpop.xlane.xlu2 %1517 }
 0xd13   :  { %2277 = vrcp.f32 %v1518_v36  ;;  %2094 = vmatmul.msk.f32.vlgmr.msra.gmra.mxu3 %vm276_vm3, %v1525_v35 }
 0xd18   :  { %v2276_v38 = vpop.eup %2275 }
 0xd19   :  { %v2278_v40 = vpop.eup %2277  ;;  %v1411_v26 = vmul.f32 %v2276_v38, %v2258_v3 }
 0xd1a   :  { %v1406_v41 = vpop.xlane.xlu2 %1405  ;;  %v1521_v32 = vpop.xlane.xlu0 %1520  ;;  %v1526_v37 = vmul.f32 %v2278_v40, %v2260_v5  ;;  %v1712_v40 = vld [vmem:[#allocation2 + $0x68] sm:$0xff] }
 0xd1b   :  { %2279 = vrcp.f32 %v1406_v41  ;;  %2085 = vmatmul.msk.f32.gmra.mxu1 %vm276_vm3, %v1411_v26  ;;  %v1711_v26 = vld [vmem:[#allocation2 + $0x60] sm:$0xff]  ;;  %v1710_v41 = vld [vmem:[#allocation2 + $0x58] sm:$0xff] }
 0xd1c   :  { %2281 = vrcp.f32 %v1521_v32  ;;  %2095 = vmatmul.msk.f32.gmra.mxu3 %vm276_vm3, %v1526_v37  ;;  %1739 = vmatpush.msrb.mxu1 %v1712_v40  ;;  %v1709_v32 = vld [vmem:[#allocation2 + $0x50] sm:$0xff]  ;;  %v1708_v37 = vld [vmem:[#allocation2 + $0x48] sm:$0xff]  ;;  %v2115_v40 = vld [vmem:[%s3270_s12 + $0x80] sm:$0xff] }
 0xd1e   :  { %1740 = vmatpush.msrb.mxu1 %v1711_v26 }
 0xd20   :  { %1741 = vmatpush.msrb.mxu1 %v1710_v41 }
 0xd21   :  { %v2280_v21 = vpop.eup %2279 }
 0xd22   :  { %v2282_v22 = vpop.eup %2281  ;;  %v1412_v20 = vmul.f32 %v2280_v21, %v2264_v60  ;;  %1742 = vmatpush.msrb.mxu1 %v1709_v32 }
 0xd23   :  { %v1527_v49 = vmul.f32 %v2282_v22, %v2266_v17 }
 0xd24   :  { %2086 = vmatmul.msk.f32.gmra.mxu1 %vm276_vm3, %v1412_v20 }
 0xd25   :  { %2096 = vmatmul.msk.f32.gmra.mxu3 %vm276_vm3, %v1527_v49  ;;  %1743 = vmatpush.msrb.mxu1 %v1708_v37 }
 0xd26   :  { %v1333_v46 = vpop.f32.mrf.mxu3 }
 0xd27   :  { %v1334_v28 = vadd.f32 %v1333_v46, %v3049_v13  ;;  %v2164_v13 = vld [vmem:[%s3267_s9 + $0x1] ss:$0 sm:$0xff]  ;;  %1744 = vmatpush.msrb.mxu1 %v1707_v42  ;;  %v2130_v46 = vld [vmem:[%s3270_s12 + $0xf8] sm:$0xff] }
 0xd28   :  { %1780 = vmatpush.msra.mxu2 %v2130_v46 }
 0xd2f   :  { %v1336_v54 = vpop.f32.mrf.mxu3 }
 0xd30   :  { %v1337_v62 = vadd.f32 %v1336_v54, %v3051_v14  ;;  %v2129_v54 = vld [vmem:[%s3270_s12 + $0xf0] sm:$0xff] }
 0xd31   :  { %v1445_v56 = vpop.f32.mrf.mxu1  ;;  %1781 = vmatpush.msra.mxu2 %v2129_v54 }
 0xd32   :  { %v1454_v43 = vadd.f32 %v1445_v56, %v1334_v28  ;;  %v2128_v56 = vld [vmem:[%s3270_s12 + $0xe8] sm:$0xff] }
 0xd33   :  { %1782 = vmatpush.msra.mxu2 %v2128_v56 }
 0xd37   :  { %v1339_v55 = vpop.f32.mrf.mxu3 }
 0xd38   :  { %v1340_v4 = vadd.f32 %v1339_v55, %v3053_v15 }
 0xd96   :  { %v1560_v57 = vpop.f32.mrf.mxu3 }
 0xd97   :  { %v1569_v58 = vadd.f32 %v1560_v57, %v1454_v43 }
 0xd98   :  { %v1448_v50 = vpop.f32.mrf.mxu1 }
 0xd99   :  { %2106 = vmatmul.msk.f32.vlgmr.msrb.gmra.mxu0 %vm157_vm1, %v1569_v58  ;;  %v1455_v63 = vadd.f32 %v1448_v50, %v1337_v62  ;;  %v2127_v58 = vld [vmem:[%s3270_s12 + $0xe0] sm:$0xff] }
 0xd9a   :  { %1783 = vmatpush.msra.mxu2 %v2127_v58 }
 0xd9f   :  { %v1563_v1 = vpop.f32.mrf.mxu3 }
 0xda0   :  { %v1570_v2 = vadd.f32 %v1563_v1, %v1455_v63  ;;  %v2165_v63 = vld [vmem:[%s3272_s14 + $0x1] ss:$0 sm:$0xff] }
 0xda1   :  { %v1451_v3 = vpop.f32.mrf.mxu1 }
 0xda2   :  { %2107 = vmatmul.msk.f32.gmra.mxu0 %vm157_vm1, %v1570_v2  ;;  %v1456_v5 = vadd.f32 %v1451_v3, %v1340_v4  ;;  %v2126_v3 = vld [vmem:[%s3270_s12 + $0xd8] sm:$0xff] }
 0xda3   :  { %1784 = vmatpush.msra.mxu2 %v2126_v3 }
 0xda8   :  { %v1566_v6 = vpop.f32.mrf.mxu3 }
 0xda9   :  { %v1571_v9 = vadd.f32 %v1566_v6, %v1456_v5 }
 0xdab   :  { %2108 = vmatmul.msk.f32.gmra.mxu0 %vm157_vm1, %v1571_v9  ;;  %v2166_v9 = vld [vmem:[%s3273_s15 + $0x1] ss:$0 sm:$0xff] }
 0xe16   :  { %v1612_v10 = vpop.f32.mrf.mxu0 }
 0xe17   :  { %v1613_v19 = vadd.f32 %v2164_v13, %v1612_v10 }
 0xe19   :  { %v1621_v14 = vadd.f32 %v1613_v19, %v2915_v25 }
 0xe1b   :  { %v1628_v0 = vsel %vm157_vm1, %v1621_v14, 0.0 }
 0xe1c   :  { %1629 = vadd.xlane.f32.xlu1 %v1628_v0 }
 0xe1f   :  { %v1615_v47 = vpop.f32.mrf.mxu0 }
 0xe20   :  { %v1616_v60 = vadd.f32 %v2164_v13, %v1615_v47 }
 0xe22   :  { %v1622_v15 = vadd.f32 %v1616_v60, %v2922_v34  ;;  %v2123_v60 = vld [vmem:[%s3270_s12 + $0xc0] sm:$0xff] }
 0xe24   :  { %v1631_v17 = vsel %vm157_vm1, %v1622_v15, 0.0 }
 0xe25   :  { %1632 = vadd.xlane.f32.xlu0 %v1631_v17 }
 0xe28   :  { %v1618_v8 = vpop.f32.mrf.mxu0 }
 0xe29   :  { %v1619_v23 = vadd.f32 %v2164_v13, %v1618_v8  ;;  %v2125_v13 = vld [vmem:[%s3270_s12 + $0xd0] sm:$0xff]  ;;  %v2122_v8 = vld [vmem:[%s3270_s12 + $0xb8] sm:$0xff] }
 0xe2a   :  { %1785 = vmatpush.msra.mxu2 %v2125_v13 }
 0xe2b   :  { %v1623_v18 = vadd.f32 %v1619_v23, %v2929_v33 }
 0xe2d   :  { %v1634_v52 = vsel %vm756_vm5, %v1623_v18, 0.0 }
 0xe2e   :  { %1635 = vadd.xlane.f32.xlu2 %v1634_v52  ;;  %v2121_v52 = vld [vmem:[%s3270_s12 + $0xb0] sm:$0xff] }
 0xe8f   :  { %v1630_v11 = vpop.xlane.xlu1 %1629 }
 0xe90   :  { %v1637_v25 = vmul.f32 %v1630_v11, %v2747_v29 }
 0xe92   :  { %v3124_v61 = vsub.f32 %v1621_v14, %v1637_v25  ;;  %v2124_v14 = vld [vmem:[%s3270_s12 + $0xc8] sm:$0xff] }
 0xe93   :  { %1786 = vmatpush.msra.mxu2 %v2124_v14 }
 0xe94   :  { %v1643_v7 = vmul.f32 %v3124_v61, %v3124_v61 }
 0xe95   :  { %1787 = vmatpush.msra.mxu2 %v2123_v60 }
 0xe96   :  { %v1646_v34 = vsel %vm157_vm1, %v1643_v7, 0.0 }
 0xe97   :  { %1647 = vadd.xlane.f32.xlu1 %v1646_v34  ;;  %1788 = vmatpush.msra.mxu2 %v2122_v8 }
 0xe98   :  { %v1633_v27 = vpop.xlane.xlu0 %1632 }
 0xe99   :  { %v1638_v30 = vmul.f32 %v1633_v27, %v2747_v29  ;;  %1789 = vmatpush.msra.mxu2 %v2121_v52  ;;  %v2119_v27 = vld [vmem:[%s3270_s12 + $0xa0] sm:$0xff] }
 0xe9b   :  { %v3130_v12 = vsub.f32 %v1622_v15, %v1638_v30 }
 0xe9d   :  { %v1644_v33 = vmul.f32 %v3130_v12, %v3130_v12 }
 0xe9f   :  { %v1649_v31 = vsel %vm157_vm1, %v1644_v33, 0.0 }
 0xea0   :  { %1650 = vadd.xlane.f32.xlu0 %v1649_v31 }
 0xea1   :  { %v1636_v59 = vpop.xlane.xlu2 %1635 }
 0xea2   :  { %v1639_v35 = vmul.f32 %v1636_v59, %v2747_v29 }
 0xea4   :  { %v3136_v24 = vsub.f32 %v1623_v18, %v1639_v35 }
 0xea6   :  { %v1645_v36 = vmul.f32 %v3136_v24, %v3136_v24 }
 0xea8   :  { %v1652_v38 = vsel %vm756_vm5, %v1645_v36, 0.0 }
 0xea9   :  { %1653 = vadd.xlane.f32.xlu2 %v1652_v38 }
 0xf0a   :  { %v1648_v44 = vpop.xlane.xlu1 %1647 }
 0xf0b   :  { %v1655_v45 = vmul.f32 %v1648_v44, %v2747_v29 }
 0xf0d   :  { %v1658_v48 = vadd.f32 1e-05, %v1655_v45 }
 0xf0f   :  { %2283 = vrsqrt.f32 %v1658_v48  ;;  %vm1667_vm3 = vweird.f32 %v1658_v48 }
 0xf13   :  { %v1651_v21 = vpop.xlane.xlu0 %1650 }
 0xf14   :  { %v1656_v22 = vmul.f32 %v1651_v21, %v2747_v29 }
 0xf15   :  { %v2284_v20 = vpop.eup %2283 }
 0xf16   :  { %v1662_v49 = vmul.f32 %v2284_v20, %v1658_v48  ;;  %v1659_v51 = vadd.f32 1e-05, %v1656_v22  ;;  %vm1668_vm2 = vweird.f32 %v2284_v20  ;;  %v2168_v22 = vld [vmem:[%s3271_s13 + $0x1] ss:$0 sm:$0xff] }
 0xf17   :  { %vm1669_vm4 = vmor %vm1667_vm3, %vm1668_vm2 }
 0xf18   :  { %v1663_v53 = vmul.f32 %v2284_v20, %v1662_v49  ;;  %2285 = vrsqrt.f32 %v1659_v51  ;;  %vm1677_vm15 = vweird.f32 %v1659_v51 }
 0xf1a   :  { %v1664_v55 = vmul.f32 0.5, %v1663_v53 }
 0xf1c   :  { %v1665_v28 = vsub.f32 1.5, %v1664_v55  ;;  %v1654_v43 = vpop.xlane.xlu2 %1653 }
 0xf1d   :  { %v1657_v57 = vmul.f32 %v1654_v43, %v2747_v29 }
 0xf1e   :  { %v2286_v50 = vpop.eup %2285  ;;  %v1666_v62 = vmul.f32 %v2284_v20, %v1665_v28 }
 0xf1f   :  { %v1672_v1 = vmul.f32 %v2286_v50, %v1659_v51  ;;  %v1660_v2 = vadd.f32 1e-05, %v1657_v57  ;;  %vm1678_vm14 = vweird.f32 %v2286_v50 }
 0xf20   :  { %v1670_v4 = vsel %vm1669_vm4, %v2284_v20, %v1666_v62  ;;  %vm1679_vm0 = vmor %vm1677_vm15, %vm1678_vm14 }
 0xf21   :  { %v1691_v5 = vmul.f32 %v1670_v4, %v3124_v61  ;;  %v1673_v6 = vmul.f32 %v2286_v50, %v1672_v1  ;;  %2287 = vrsqrt.f32 %v1660_v2  ;;  %v2120_v61 = vld [vmem:[%s3270_s12 + $0xa8] sm:$0xff]  ;;  %vm1687_vm7 = vweird.f32 %v1660_v2 }
 0xf22   :  { %1790 = vmatpush.msra.mxu2 %v2120_v61 }
 0xf23   :  { %v1697_v10 = vmul.f32 %v2165_v63, %v1691_v5  ;;  %v1674_v19 = vmul.f32 0.5, %v1673_v6 }
 0xf24   :  { %1791 = vmatpush.msra.mxu2 %v2119_v27 }
 0xf25   :  { %v1675_v0 = vsub.f32 1.5, %v1674_v19  ;;  %v1703_v47 = vadd.f32 %v2166_v9, %v1697_v10 }
 0xf27   :  { %v2288_v15 = vpop.eup %2287  ;;  %v1676_v17 = vmul.f32 %v2286_v50, %v1675_v0  ;;  %2112 = vmatmul.msk.f32.vlgmr.msrb.gmra.mxu1 %vm157_vm1, %v1703_v47 }
 0xf28   :  { %v1682_v23 = vmul.f32 %v2288_v15, %v1660_v2  ;;  %vm1688_vm6 = vweird.f32 %v2288_v15 }
 0xf29   :  { %v1680_v18 = vsel %vm1679_vm0, %v2286_v50, %v1676_v17  ;;  %vm1689_vm8 = vmor %vm1687_vm7, %vm1688_vm6 }
 0xf2a   :  { %v1683_v11 = vmul.f32 %v2288_v15, %v1682_v23  ;;  %v1692_v25 = vmul.f32 %v1680_v18, %v3130_v12  ;;  %v2118_v12 = vld [vmem:[%s3270_s12 + $0x98] sm:$0xff] }
 0xf2b   :  { %1792 = vmatpush.msra.mxu2 %v2118_v12 }
 0xf2c   :  { %v1684_v7 = vmul.f32 0.5, %v1683_v11  ;;  %v1698_v34 = vmul.f32 %v2165_v63, %v1692_v25 }
 0xf2d   :  { %1793 = vmatpush.msra.mxu2 %v2117_v39 }
 0xf2e   :  { %v1685_v30 = vsub.f32 1.5, %v1684_v7  ;;  %v1704_v33 = vadd.f32 %v2166_v9, %v1698_v34 }
 0xf2f   :  { %1794 = vmatpush.msra.mxu2 %v2116_v16 }
 0xf30   :  { %v1686_v31 = vmul.f32 %v2288_v15, %v1685_v30  ;;  %2113 = vmatmul.msk.f32.gmra.mxu1 %vm157_vm1, %v1704_v33 }
 0xf31   :  { %1795 = vmatpush.msra.mxu2 %v2115_v40 }
 0xf32   :  { %v1690_v59 = vsel %vm1689_vm8, %v2288_v15, %v1686_v31  ;;  %v2169_v31 = vld [vmem:[%s3274_s16 + $0x1] ss:$0 sm:$0xff] }
 0xf33   :  { %v1693_v35 = vmul.f32 %v1690_v59, %v3136_v24  ;;  %v2167_v24 = vld [vmem:[%s3269_s11 + $0x1] ss:$0 sm:$0xff] }
 0xf35   :  { %v1699_v36 = vmul.f32 %v2165_v63, %v1693_v35 }
 0xf37   :  { %v1705_v38 = vadd.f32 %v2166_v9, %v1699_v36 }
 0xf39   :  { %2114 = vmatmul.msk.f32.gmra.mxu1 %vm157_vm1, %v1705_v38 }
 0xfa4   :  { %v1746_v26 = vpop.f32.mrf.mxu1 }
 0xfa5   :  { %v1747_v41 = vadd.f32 %v2167_v24, %v1746_v26 }
 0xfa7   :  { %v1755_v32 = vmax.f32 %v1747_v41, 0.0 }
 0xfa9   :  { %1796 = vmatmul.f32.vlgmr.msra.gmra.mxu2 %v1755_v32 }
 0xfad   :  { %v1749_v37 = vpop.f32.mrf.mxu1 }
 0xfae   :  { %v1750_v42 = vadd.f32 %v2167_v24, %v1749_v37 }
 0xfb0   :  { %v1756_v44 = vmax.f32 %v1750_v42, 0.0 }
 0xfb2   :  { %1799 = vmatmul.f32.gmra.mxu2 %v1756_v44 }
 0xfb6   :  { %v1752_v45 = vpop.f32.mrf.mxu1 }
 0xfb7   :  { %v1753_v48 = vadd.f32 %v2167_v24, %v1752_v45 }
 0xfb9   :  { %v1757_v21 = vmax.f32 %v1753_v48, 0.0 }
 0xfbb   :  { %1802 = vmatmul.f32.gmra.mxu2 %v1757_v21 }
0x102c   :  { %v1797_v20 = vpop.f32.mrf.mxu2 }
0x102d   :  { %v1798_v49 = vadd.f32 %v2168_v22, %v1797_v20 }
0x102f   :  { %v1806_v51 = vadd.f32 %v1798_v49, %v1703_v47 }
0x1031   :  { %v1813_v53 = vsel %vm157_vm1, %v1806_v51, 0.0 }
0x1032   :  { %1814 = vadd.xlane.f32.xlu1 %v1813_v53 }
0x1035   :  { %v1800_v46 = vpop.f32.mrf.mxu2 }
0x1036   :  { %v1801_v54 = vadd.f32 %v2168_v22, %v1800_v46 }
0x1038   :  { %v1807_v55 = vadd.f32 %v1801_v54, %v1704_v33 }
0x103a   :  { %v1816_v56 = vsel %vm157_vm1, %v1807_v55, 0.0 }
0x103b   :  { %1817 = vadd.xlane.f32.xlu0 %v1816_v56 }
0x103e   :  { %v1803_v28 = vpop.f32.mrf.mxu2 }
0x103f   :  { %v1804_v43 = vadd.f32 %v2168_v22, %v1803_v28 }
0x1041   :  { %v1808_v57 = vadd.f32 %v1804_v43, %v1705_v38  ;;  %v2170_v38 = vld [vmem:[%s3275_s17 + $0x1] ss:$0 sm:$0xff] }
0x1043   :  { %v1819_v58 = vsel %vm756_vm5, %v1808_v57, 0.0 }
0x1044   :  { %1820 = vadd.xlane.f32.xlu2 %v1819_v58 }
0x10a5   :  { %v1815_v50 = vpop.xlane.xlu1 %1814 }
0x10a6   :  { %v1822_v62 = vmul.f32 %v1815_v50, %v2747_v29 }
0x10a8   :  { %v1825_v63 = vsub.f32 %v1806_v51, %v1822_v62 }
0x10aa   :  { %v1828_v1 = vmul.f32 %v1825_v63, %v1825_v63 }
0x10ac   :  { %v1831_v2 = vsel %vm157_vm1, %v1828_v1, 0.0 }
0x10ad   :  { %1832 = vadd.xlane.f32.xlu1 %v1831_v2 }
0x10ae   :  { %v1818_v3 = vpop.xlane.xlu0 %1817 }
0x10af   :  { %v1823_v4 = vmul.f32 %v1818_v3, %v2747_v29 }
0x10b1   :  { %v1826_v5 = vsub.f32 %v1807_v55, %v1823_v4 }
0x10b3   :  { %v1829_v6 = vmul.f32 %v1826_v5, %v1826_v5 }
0x10b5   :  { %v1834_v9 = vsel %vm157_vm1, %v1829_v6, 0.0 }
0x10b6   :  { %1835 = vadd.xlane.f32.xlu0 %v1834_v9 }
0x10b7   :  { %v1821_v13 = vpop.xlane.xlu2 %1820 }
0x10b8   :  { %v1824_v10 = vmul.f32 %v1821_v13, %v2747_v29 }
0x10ba   :  { %v1827_v19 = vsub.f32 %v1808_v57, %v1824_v10 }
0x10bc   :  { %v1830_v14 = vmul.f32 %v1827_v19, %v1827_v19 }
0x10be   :  { %v1837_v0 = vsel %vm756_vm5, %v1830_v14, 0.0 }
0x10bf   :  { %1838 = vadd.xlane.f32.xlu2 %v1837_v0 }
0x1120   :  { %v1833_v47 = vpop.xlane.xlu1 %1832 }
0x1121   :  { %v1840_v60 = vmul.f32 %v1833_v47, %v2747_v29 }
0x1123   :  { %v1843_v15 = vadd.f32 1e-05, %v1840_v60 }
0x1125   :  { %2289 = vrsqrt.f32 %v1843_v15  ;;  %vm1852_vm10 = vweird.f32 %v1843_v15 }
0x1129   :  { %v1836_v17 = vpop.xlane.xlu0 %1835 }
0x112a   :  { %v1841_v8 = vmul.f32 %v1836_v17, %v2747_v29 }
0x112b   :  { %v2290_v23 = vpop.eup %2289 }
0x112c   :  { %v1847_v18 = vmul.f32 %v2290_v23, %v1843_v15  ;;  %v1844_v52 = vadd.f32 1e-05, %v1841_v8  ;;  %vm1853_vm9 = vweird.f32 %v2290_v23 }
0x112d   :  { %vm1854_vm11 = vmor %vm1852_vm10, %vm1853_vm9 }
0x112e   :  { %v1848_v11 = vmul.f32 %v2290_v23, %v1847_v18  ;;  %2291 = vrsqrt.f32 %v1844_v52  ;;  %vm1862_vm13 = vweird.f32 %v1844_v52 }
0x1130   :  { %v1849_v25 = vmul.f32 0.5, %v1848_v11 }
0x1132   :  { %v1850_v61 = vsub.f32 1.5, %v1849_v25  ;;  %v1839_v7 = vpop.xlane.xlu2 %1838 }
0x1133   :  { %v1842_v34 = vmul.f32 %v1839_v7, %v2747_v29  ;;  %v2171_v7 = vld [vmem:[%s3276_s18] ss:$0 sm:$0xff] }
0x1134   :  { %v2292_v27 = vpop.eup %2291  ;;  %v1851_v30 = vmul.f32 %v2290_v23, %v1850_v61 }
0x1135   :  { %v1857_v33 = vmul.f32 %v2292_v27, %v1844_v52  ;;  %v1845_v12 = vadd.f32 1e-05, %v1842_v34  ;;  %vm1863_vm12 = vweird.f32 %v2292_v27 }
0x1136   :  { %v1855_v59 = vsel %vm1854_vm11, %v2290_v23, %v1851_v30  ;;  %vm1864_vm2 = vmor %vm1862_vm13, %vm1863_vm12 }
0x1137   :  { %v1858_v35 = vmul.f32 %v2292_v27, %v1857_v33  ;;  %2293 = vrsqrt.f32 %v1845_v12  ;;  %v1876_v36 = vmul.f32 %v1855_v59, %v1825_v63  ;;  %vm1872_vm4 = vweird.f32 %v1845_v12  ;;  %v2172_v33 = vld [vmem:[%s3277_s19] ss:$0 sm:$0xff] }
0x1139   :  { %v1859_v39 = vmul.f32 0.5, %v1858_v35  ;;  %v1882_v16 = vmul.f32 %v2169_v31, %v1876_v36 }
0x113b   :  { %v1860_v40 = vsub.f32 1.5, %v1859_v39  ;;  %v1888_v24 = vadd.f32 %v2170_v38, %v1882_v16 }
0x113d   :  { %v2294_v26 = vpop.eup %2293  ;;  %v1861_v41 = vmul.f32 %v2292_v27, %v1860_v40  ;;  %v1893_v32 = vsel %vm157_vm1, %v1888_v24, 0.0 }
0x113e   :  { %v1867_v37 = vmul.f32 %v2294_v26, %v1845_v12  ;;  %1894 = vadd.xlane.f32.xlu1 %v1893_v32  ;;  %vm1873_vm3 = vweird.f32 %v2294_v26 }
0x113f   :  { %v1865_v42 = vsel %vm1864_vm2, %v2292_v27, %v1861_v41  ;;  %vm1874_vm14 = vmor %vm1872_vm4, %vm1873_vm3 }
0x1140   :  { %v1868_v44 = vmul.f32 %v2294_v26, %v1867_v37  ;;  %v1877_v45 = vmul.f32 %v1865_v42, %v1826_v5 }
0x1142   :  { %v1869_v48 = vmul.f32 0.5, %v1868_v44  ;;  %v1883_v21 = vmul.f32 %v2169_v31, %v1877_v45 }
0x1144   :  { %v1870_v22 = vsub.f32 1.5, %v1869_v48  ;;  %v1889_v20 = vadd.f32 %v2170_v38, %v1883_v21 }
0x1146   :  { %v1871_v49 = vmul.f32 %v2294_v26, %v1870_v22  ;;  %v1896_v51 = vsel %vm157_vm1, %v1889_v20, 0.0 }
0x1147   :  { %1897 = vadd.xlane.f32.xlu0 %v1896_v51 }
0x1148   :  { %v1875_v53 = vsel %vm1874_vm14, %v2294_v26, %v1871_v49 }
0x1149   :  { %v1878_v46 = vmul.f32 %v1875_v53, %v1827_v19 }
0x114b   :  { %v1884_v54 = vmul.f32 %v2169_v31, %v1878_v46 }
0x114d   :  { %v1890_v55 = vadd.f32 %v2170_v38, %v1884_v54 }
0x114f   :  { %v1899_v56 = vsel %vm756_vm5, %v1890_v55, 0.0 }
0x1150   :  { %1900 = vadd.xlane.f32.xlu2 %v1899_v56 }
0x11b1   :  { %v1895_v28 = vpop.xlane.xlu1 %1894 }
0x11b2   :  { %v1902_v43 = vmul.f32 %v1895_v28, %v2747_v29 }
0x11b4   :  { %v1905_v57 = vsub.f32 %v1888_v24, %v1902_v43 }
0x11b6   :  { %v1908_v58 = vmul.f32 %v1905_v57, %v1905_v57 }
0x11b8   :  { %v1911_v50 = vsel %vm157_vm1, %v1908_v58, 0.0 }
0x11b9   :  { %1912 = vadd.xlane.f32.xlu1 %v1911_v50 }
0x11ba   :  { %v1898_v62 = vpop.xlane.xlu0 %1897 }
0x11bb   :  { %v1903_v63 = vmul.f32 %v1898_v62, %v2747_v29 }
0x11bd   :  { %v1906_v1 = vsub.f32 %v1889_v20, %v1903_v63 }
0x11bf   :  { %v1909_v2 = vmul.f32 %v1906_v1, %v1906_v1 }
0x11c1   :  { %v1914_v3 = vsel %vm157_vm1, %v1909_v2, 0.0 }
0x11c2   :  { %1915 = vadd.xlane.f32.xlu0 %v1914_v3 }
0x11c3   :  { %v1901_v4 = vpop.xlane.xlu2 %1900 }
0x11c4   :  { %v1904_v5 = vmul.f32 %v1901_v4, %v2747_v29 }
0x11c6   :  { %v1907_v6 = vsub.f32 %v1890_v55, %v1904_v5 }
0x11c8   :  { %v1910_v9 = vmul.f32 %v1907_v6, %v1907_v6 }
0x11ca   :  { %v1917_v13 = vsel %vm756_vm5, %v1910_v9, 0.0 }
0x11cb   :  { %1918 = vadd.xlane.f32.xlu2 %v1917_v13 }
0x122c   :  { %v1913_v10 = vpop.xlane.xlu1 %1912 }
0x122d   :  { %v1920_v19 = vmul.f32 %v1913_v10, %v2747_v29 }
0x122f   :  { %v1923_v14 = vadd.f32 1e-05, %v1920_v19 }
0x1231   :  { %2295 = vrsqrt.f32 %v1923_v14  ;;  %vm1932_vm0 = vweird.f32 %v1923_v14 }
0x1235   :  { %v1916_v0 = vpop.xlane.xlu0 %1915 }
0x1236   :  { %v1921_v47 = vmul.f32 %v1916_v0, %v2747_v29 }
0x1237   :  { %v2296_v60 = vpop.eup %2295 }
0x1238   :  { %v1927_v15 = vmul.f32 %v2296_v60, %v1923_v14  ;;  %v1924_v17 = vadd.f32 1e-05, %v1921_v47  ;;  %vm1933_vm15 = vweird.f32 %v2296_v60 }
0x1239   :  { %vm1934_vm6 = vmor %vm1932_vm0, %vm1933_vm15 }
0x123a   :  { %v1928_v8 = vmul.f32 %v2296_v60, %v1927_v15  ;;  %2297 = vrsqrt.f32 %v1924_v17  ;;  %vm1942_vm8 = vweird.f32 %v1924_v17 }
0x123c   :  { %v1929_v23 = vmul.f32 0.5, %v1928_v8 }
0x123e   :  { %v1930_v18 = vsub.f32 1.5, %v1929_v23  ;;  %v1919_v52 = vpop.xlane.xlu2 %1918 }
0x123f   :  { %v1922_v11 = vmul.f32 %v1919_v52, %v2747_v29 }
0x1240   :  { %v2298_v25 = vpop.eup %2297  ;;  %v1931_v61 = vmul.f32 %v2296_v60, %v1930_v18 }
0x1241   :  { %v1937_v34 = vmul.f32 %v2298_v25, %v1924_v17  ;;  %v1925_v27 = vadd.f32 1e-05, %v1922_v11  ;;  %vm1943_vm7 = vweird.f32 %v2298_v25 }
0x1242   :  { %v1935_v30 = vsel %vm1934_vm6, %v2296_v60, %v1931_v61  ;;  %vm1944_vm9 = vmor %vm1942_vm8, %vm1943_vm7 }
0x1243   :  { %v1956_v12 = vmul.f32 %v1935_v30, %v1905_v57  ;;  %v1938_v31 = vmul.f32 %v2298_v25, %v1937_v34  ;;  %2299 = vrsqrt.f32 %v1925_v27  ;;  %vm1952_vm11 = vweird.f32 %v1925_v27 }
0x1245   :  { %v1962_v59 = vmul.f32 %v2171_v7, %v1956_v12  ;;  %v1939_v29 = vmul.f32 0.5, %v1938_v31 }
0x1247   :  { %v1968_v35 = vadd.f32 %v2172_v33, %v1962_v59  ;;  %v1940_v36 = vsub.f32 1.5, %v1939_v29 }
0x1249   :  { %v2300_v38 = vpop.eup %2299  ;;  %1971 = vst.msk [vmem:[%s3278_s20] sm:$0xff] %vm157_vm1, %v1968_v35  ;;  %v1941_v39 = vmul.f32 %v2298_v25, %v1940_v36 }
0x124a   :  { %v1947_v16 = vmul.f32 %v2300_v38, %v1925_v27  ;;  %vm1953_vm10 = vweird.f32 %v2300_v38 }
0x124b   :  { %v1945_v40 = vsel %vm1944_vm9, %v2298_v25, %v1941_v39  ;;  %vm1954_vm12 = vmor %vm1952_vm11, %vm1953_vm10 }
0x124c   :  { %v1957_v24 = vmul.f32 %v1945_v40, %v1906_v1  ;;  %v1948_v26 = vmul.f32 %v2300_v38, %v1947_v16 }
0x124e   :  { %v1963_v41 = vmul.f32 %v2171_v7, %v1957_v24  ;;  %v1949_v32 = vmul.f32 0.5, %v1948_v26 }
0x1250   :  { %v1969_v37 = vadd.f32 %v2172_v33, %v1963_v41  ;;  %v1950_v42 = vsub.f32 1.5, %v1949_v32 }
0x1252   :  { %1972 = vst.msk [vmem:[%s3278_s20 + $0x8] sm:$0xff] %vm157_vm1, %v1969_v37  ;;  %v1951_v44 = vmul.f32 %v2300_v38, %v1950_v42 }
0x1254   :  { %v1955_v45 = vsel %vm1954_vm12, %v2300_v38, %v1951_v44 }
0x1255   :  { %v1958_v48 = vmul.f32 %v1955_v45, %v1907_v6 }
0x1257   :  { %v1964_v21 = vmul.f32 %v2171_v7, %v1958_v48 }
0x1259   :  { %v1970_v22 = vadd.f32 %v2172_v33, %v1964_v21 }
0x125b   :  { %1973 = vst.msk [vmem:[%s3278_s20 + $0x10] sm:$0xf] %vm756_vm5, %v1970_v22 }
0x125c   :  { %1978 = vsyncpa [#allocation3], 1 }

</bundles_post_ra>
